<compile_context>
chip_gen: v7x
topology: tpu7x:2x2x1
jax: 0.10.0
libtpu: 0.0.40
codegen_flags: <defaults>
</compile_context>

<pallas_src>
import functools

import jax
import jax.numpy as jnp
from jax import lax
from jax.experimental import pallas as pl
from jax.experimental.pallas import tpu as pltpu

EPS = 1e-5  # PyTorch BatchNorm2d default


def _vmem_limit_bytes():
    # ~3/4 of physical VMEM: v7x 64 MiB -> 48 MiB, v5e/v6e 128 MiB -> 96 MiB.
    try:
        cap = pltpu.get_tpu_info().vmem_capacity_bytes
    except Exception:
        cap = 64 * 1024 * 1024
    return max(32 * 1024 * 1024, min(int(cap) * 3 // 4, 96 * 1024 * 1024))


def _pick_row_block(h, w):
    """Largest divisor TH of h with TH*W (the MXU M dim) capped near 1024 rows,
    preferring TH*W to be a multiple of 8 (clean sublane collapse)."""
    cap = max(1, min(h, 1024 // max(w, 1)))
    best, best_aligned = 1, 0
    for t in range(1, cap + 1):
        if h % t == 0:
            best = t
            if (t * w) % 8 == 0:
                best_aligned = t
    return best_aligned if best_aligned else best


def _pick_row_tile(m):
    """Row tile for the BN/ReLU pass: multiple of 8, capped at 1024 rows."""
    for t in (1024, 512, 256, 128, 64, 32, 16, 8):
        if m % t == 0:
            return t
    return min(m, 512)  # ragged last tile handled by the cdiv grid (masked boundary)


def _conv_stats_kernel(x_ref, w_ref, y_ref, ysum_ref, ysq_ref):
    # x_ref : (1, 1, TH+2, W+2, C_in) bf16 -- padded input row slab (with halo rows)
    # w_ref : (9*C_in, C_out)         bf16 -- resident weight, taps flattened into K
    # y_ref : (TH*W, C_out)           bf16 -- pre-BN conv output tile (unpadded channels)
    # ysum_ref, ysq_ref : (1, 1, C_out) f32 -- per-batch partial stats, resident over j
    @pl.when(pl.program_id(1) == 0)
    def _init():
        ysum_ref[...] = jnp.zeros_like(ysum_ref)
        ysq_ref[...] = jnp.zeros_like(ysq_ref)

    th = x_ref.shape[2] - 2
    w_out = x_ref.shape[3] - 2
    c_in = x_ref.shape[4]
    c_out = y_ref.shape[1]

    x = x_ref[0, 0]                                   # (TH+2, W+2, C_in)

    if c_in <= 64:
        # In-kernel im2col: one MXU matmul with K = 9*C_in (vs 9 matmuls with K = C_in).
        taps = [x[dh:dh + th, dw:dw + w_out, :]
                for dh in range(3) for dw in range(3)]
        patch = jnp.concatenate(taps, axis=-1)        # (TH, W, 9*C_in)
        patch = patch.reshape(th * w_out, 9 * c_in)
        acc = jnp.dot(patch, w_ref[...], preferred_element_type=jnp.float32)
    else:
        # Large C_in: K is already fine -> 9 shifted-window matmuls over the full slab.
        acc = jnp.zeros((th * w_out, c_out), jnp.float32)
        for dh in range(3):
            for dw in range(3):
                lhs = x[dh:dh + th, dw:dw + w_out, :].reshape(th * w_out, c_in)
                k0 = (dh * 3 + dw) * c_in
                acc = acc + jnp.dot(lhs, w_ref[k0:k0 + c_in, :],
                                    preferred_element_type=jnp.float32)

    y_ref[...] = acc.astype(y_ref.dtype)
    # Batch statistics accumulated from the f32 accumulator, before the bf16 downcast.
    ysum_ref[0] += jnp.sum(acc, axis=0, keepdims=True)
    ysq_ref[0] += jnp.sum(acc * acc, axis=0, keepdims=True)


def _bn_relu_kernel(y_ref, scale_ref, shift_ref, o_ref):
    # y_ref: (TM, C_out) bf16; scale/shift: (1, C_out) f32; o_ref: (TM, C_out) f32
    y = y_ref[...].astype(jnp.float32)
    o_ref[...] = jnp.maximum(y * scale_ref[...] + shift_ref[...], 0.0)


@functools.partial(jax.jit, static_argnames=("kernel_size",))
def conv2d_block_forward(x, weight, gamma, beta, kernel_size=3):
    """x: (N, C_in, H, W); weight: (C_out, C_in, 3, 3); gamma/beta: (C_out,).
    Returns (N, C_out, H, W) float32 (conv -> training-mode BN -> ReLU)."""
    # The module's activation branch hard-codes padding=1; shape-preserving only for k=3.
    assert kernel_size == 3, "conv2d_block Pallas kernel implements kernel_size=3"
    n, c_in, h, w = x.shape
    c_out = weight.shape[0]

    th = _pick_row_block(h, w)                        # output rows per grid step
    n_hb = h // th
    m_rows = n * h * w
    vmem_limit = _vmem_limit_bytes()

    # --- glue: NHWC + spatial halo pad, bf16 MXU operands --------------------------
    x_nhwc = jnp.transpose(x, (0, 2, 3, 1)).astype(jnp.bfloat16)
    xp = jnp.pad(x_nhwc, ((0, 0), (1, 1), (1, 1), (0, 0)))        # (N, H+2, W+2, C_in)
    # Row slabs with halos, materialized wrapper-side ((TH+2)/TH ~= 1.1x of the small
    # input) so the kernel uses plain Blocked specs: (N, H/TH, TH+2, W+2, C_in).
    xs = jnp.stack([xp[:, j * th:j * th + th + 2] for j in range(n_hb)], axis=1)

    w_k = jnp.transpose(weight, (2, 3, 1, 0)).astype(jnp.bfloat16)  # (3,3,C_in,C_out)
    w_k = w_k.reshape(9 * c_in, c_out)                # tap-major, C_in-minor K layout

    # ------------------- call 1: conv (one fused matmul / slab) + batch stats ------
    flops1 = 2 * m_rows * (9 * c_in) * c_out
    bytes1 = (n * n_hb * (th + 2) * (w + 2) * c_in * 2 + 9 * c_in * c_out * 2
              + m_rows * c_out * 2 + 2 * n * c_out * 4)
    conv_call = pl.pallas_call(
        _conv_stats_kernel,
        grid=(n, n_hb),
        in_specs=[
            pl.BlockSpec((1, 1, th + 2, w + 2, c_in), lambda i, j: (i, j, 0, 0, 0)),
            pl.BlockSpec((9 * c_in, c_out), lambda i, j: (0, 0)),   # resident weight
        ],
        out_specs=(
            pl.BlockSpec((th * w, c_out), lambda i, j: (i * n_hb + j, 0)),
            pl.BlockSpec((1, 1, c_out), lambda i, j: (i, 0, 0)),    # per-batch partials
            pl.BlockSpec((1, 1, c_out), lambda i, j: (i, 0, 0)),
        ),
        out_shape=(
            jax.ShapeDtypeStruct((m_rows, c_out), jnp.bfloat16),    # bf16 intermediate
            jax.ShapeDtypeStruct((n, 1, c_out), jnp.float32),
            jax.ShapeDtypeStruct((n, 1, c_out), jnp.float32),
        ),
        compiler_params=pltpu.CompilerParams(
            dimension_semantics=("parallel", "arbitrary"),
            vmem_limit_bytes=vmem_limit),
        cost_estimate=pl.CostEstimate(flops=flops1, transcendentals=0,
                                      bytes_accessed=bytes1),
    )
    y, ysum, ysq = conv_call(xs, w_k)

    # --------- tiny (C_out,)-sized stat finalize: scale/shift for the fused FMA ----
    inv_m = jnp.float32(1.0 / m_rows)
    mean = jnp.sum(ysum, axis=(0, 1)) * inv_m
    var = jnp.maximum(jnp.sum(ysq, axis=(0, 1)) * inv_m - mean * mean, 0.0)
    scale_v = gamma.astype(jnp.float32) * lax.rsqrt(var + EPS)
    shift_v = beta.astype(jnp.float32) - mean * scale_v
    scale = scale_v.reshape(1, c_out)
    shift = shift_v.reshape(1, c_out)

    # ------------------- call 2: y * scale + shift, ReLU ---------------------------
    tm = _pick_row_tile(m_rows)
    bn_call = pl.pallas_call(
        _bn_relu_kernel,
        grid=(pl.cdiv(m_rows, tm),),
        in_specs=[
            pl.BlockSpec((tm, c_out), lambda i: (i, 0)),
            pl.BlockSpec((1, c_out), lambda i: (0, 0)),
            pl.BlockSpec((1, c_out), lambda i: (0, 0)),
        ],
        out_specs=pl.BlockSpec((tm, c_out), lambda i: (i, 0)),
        out_shape=jax.ShapeDtypeStruct((m_rows, c_out), jnp.float32),
        compiler_params=pltpu.CompilerParams(
            dimension_semantics=("parallel",),
            vmem_limit_bytes=vmem_limit),
        cost_estimate=pl.CostEstimate(
            flops=2 * m_rows * c_out, transcendentals=0,
            bytes_accessed=m_rows * c_out * (2 + 4) + 2 * c_out * 4),
    )
    out_flat = bn_call(y, scale, shift)

    # glue: back to NCHW to match the PyTorch module (channel slice is gone — call 2
    # already writes only c_out channels).
    # TODO(synk): return NHWC (out_flat.reshape(n, h, w, c_out)) directly if the
    # consumer accepts channels-last; the transpose below is pure layout plumbing.
    return jnp.transpose(out_flat.reshape(n, h, w, c_out), (0, 3, 1, 2))


def _reference(x, weight, gamma, beta):
    # Pure-JAX f32 reference: conv -> training-mode BN -> ReLU (for verification).
    y = lax.conv_general_dilated(
        x.astype(jnp.float32), weight.astype(jnp.float32),
        window_strides=(1, 1), padding=((1, 1), (1, 1)),
        dimension_numbers=("NCHW", "OIHW", "NCHW"))
    mean = jnp.mean(y, axis=(0, 2, 3), keepdims=True)
    var = jnp.mean((y - mean) ** 2, axis=(0, 2, 3), keepdims=True)
    y = (y - mean) * lax.rsqrt(var + EPS)
    y = y * gamma.reshape(1, -1, 1, 1) + beta.reshape(1, -1, 1, 1)
    return jnp.maximum(y, 0.0)


if __name__ == "__main__":
    key = jax.random.PRNGKey(0)
    k_x, k_w, k_g = jax.random.split(key, 3)

    N, C_IN, C_OUT, H, W, K = 2, 4, 8, 16, 16, 3

    x = jax.random.normal(k_x, (N, C_IN, H, W), dtype=jnp.float32)

    # Deterministic "kaiming_normal_(fan_in)" init: std = sqrt(2 / fan_in).
    fan_in = C_IN * K * K
    weight = jax.random.normal(k_w, (C_OUT, C_IN, K, K), dtype=jnp.float32) * jnp.sqrt(2.0 / fan_in)
    # BatchNorm: weight ~ N(1.0, 0.02), bias = 0.
    gamma = 1.0 + 0.02 * jax.random.normal(k_g, (C_OUT,), dtype=jnp.float32)
    beta = jnp.zeros((C_OUT,), dtype=jnp.float32)

    out = conv2d_block_forward(x, weight, gamma, beta, kernel_size=K)
    out = jax.block_until_ready(out)

    ref = jax.block_until_ready(_reference(x, weight, gamma, beta))
    assert out.shape == (N, C_OUT, H, W)
    err = float(jnp.max(jnp.abs(out - ref)))
    # bf16 MXU operands + bf16 pre-BN intermediate => loosened tolerance
    # (bug-level errors would be O(1)).
    assert err < 5e-2, f"mismatch vs reference: {err}"

    print("KERNEL_OK")
</pallas_src>

<mosaic_0001>
module attributes {stable_mosaic.version = 11 : i64} {
  func.func @_bn_relu_kernel(%arg0: i32, %arg1: memref<512x8xbf16, #tpu.memory_space<vmem>>, %arg2: memref<1x8xf32, #tpu.memory_space<vmem>>, %arg3: memref<1x8xf32, #tpu.memory_space<vmem>>, %arg4: memref<512x8xf32, #tpu.memory_space<vmem>>) attributes {dimension_semantics = [#tpu.dimension_semantics<parallel>], iteration_bounds = array<i64: 1>, scalar_prefetch = 0 : i64, scratch_operands = 0 : i64, tpu.core_type = #tpu.core_type<tc>, window_params = [{transform_indices = @transform_0, window_bounds = array<i64: 512, 8>}, {pipeline_mode = #tpu.pipeline_mode<synchronous>, transform_indices = @transform_1, window_bounds = array<i64: 1, 8>}, {pipeline_mode = #tpu.pipeline_mode<synchronous>, transform_indices = @transform_2, window_bounds = array<i64: 1, 8>}, {transform_indices = @transform_3, window_bounds = array<i64: 512, 8>}]} {
    %c0 = arith.constant 0 : index
    %c0_0 = arith.constant 0 : index
    %0 = vector.load %arg1[%c0, %c0_0] : memref<512x8xbf16, #tpu.memory_space<vmem>>, vector<512x8xbf16>
    %1 = arith.extf %0 : vector<512x8xbf16> to vector<512x8xf32>
    %c0_1 = arith.constant 0 : index
    %c0_2 = arith.constant 0 : index
    %2 = vector.load %arg2[%c0_1, %c0_2] : memref<1x8xf32, #tpu.memory_space<vmem>>, vector<1x8xf32>
    %3 = vector.broadcast %2 : vector<1x8xf32> to vector<512x8xf32>
    %4 = arith.mulf %1, %3 : vector<512x8xf32>
    %c0_3 = arith.constant 0 : index
    %c0_4 = arith.constant 0 : index
    %5 = vector.load %arg3[%c0_3, %c0_4] : memref<1x8xf32, #tpu.memory_space<vmem>>, vector<1x8xf32>
    %6 = vector.broadcast %5 : vector<1x8xf32> to vector<512x8xf32>
    %7 = arith.addf %4, %6 : vector<512x8xf32>
    %cst = arith.constant 0.000000e+00 : f32
    %8 = vector.broadcast %cst : f32 to vector<512x8xf32>
    %9 = arith.maximumf %7, %8 : vector<512x8xf32>
    %c0_5 = arith.constant 0 : index
    %c0_6 = arith.constant 0 : index
    %10 = vector.load %arg4[%c0_5, %c0_6] : memref<512x8xf32, #tpu.memory_space<vmem>>, vector<512x8xf32>
    tpu.vector_store %arg4[%c0_5, %c0_6], %9 {strides = array<i32>} : memref<512x8xf32, #tpu.memory_space<vmem>>, vector<512x8xf32>,
    return
  }
  func.func @transform_0(%arg0: i32) -> (i32, i32) {
    %c0_i32 = arith.constant 0 : i32
    %c0_i32_0 = arith.constant 0 : i32
    return %arg0, %c0_i32 : i32, i32
  }
  func.func @transform_1(%arg0: i32) -> (i32, i32) {
    %c0_i32 = arith.constant 0 : i32
    %c0_i32_0 = arith.constant 0 : i32
    %c0_i32_1 = arith.constant 0 : i32
    return %c0_i32, %c0_i32_0 : i32, i32
  }
  func.func @transform_2(%arg0: i32) -> (i32, i32) {
    %c0_i32 = arith.constant 0 : i32
    %c0_i32_0 = arith.constant 0 : i32
    %c0_i32_1 = arith.constant 0 : i32
    return %c0_i32, %c0_i32_0 : i32, i32
  }
  func.func @transform_3(%arg0: i32) -> (i32, i32) {
    %c0_i32 = arith.constant 0 : i32
    %c0_i32_0 = arith.constant 0 : i32
    return %arg0, %c0_i32 : i32, i32
  }
}

module attributes {stable_mosaic.version = 11 : i64} {
  func.func @_conv_stats_kernel(%arg0: i32, %arg1: i32, %arg2: memref<1x1x18x18x4xbf16, #tpu.memory_space<vmem>>, %arg3: memref<36x8xbf16, #tpu.memory_space<vmem>>, %arg4: memref<256x8xbf16, #tpu.memory_space<vmem>>, %arg5: memref<1x1x8xf32, #tpu.memory_space<vmem>>, %arg6: memref<1x1x8xf32, #tpu.memory_space<vmem>>) attributes {dimension_semantics = [#tpu.dimension_semantics<parallel>, #tpu.dimension_semantics<arbitrary>], iteration_bounds = array<i64: 2, 1>, scalar_prefetch = 0 : i64, scratch_operands = 0 : i64, tpu.core_type = #tpu.core_type<tc>, window_params = [{transform_indices = @transform_0, window_bounds = array<i64: 1, 1, 18, 18, 4>}, {pipeline_mode = #tpu.pipeline_mode<synchronous>, transform_indices = @transform_1, window_bounds = array<i64: 36, 8>}, {transform_indices = @transform_2, window_bounds = array<i64: 256, 8>}, {transform_indices = @transform_3, window_bounds = array<i64: 1, 1, 8>}, {transform_indices = @transform_4, window_bounds = array<i64: 1, 1, 8>}]} {
    %c0_i32 = arith.constant 0 : i32
    %0 = arith.cmpi eq, %arg1, %c0_i32 : i32
    %1 = arith.extui %0 : i1 to i32
    %c0_i32_0 = arith.constant 0 : i32
    %2 = arith.cmpi ne, %1, %c0_i32_0 : i32
    scf.if %2 {
      %cst_23 = arith.constant 0.000000e+00 : f32
      %37 = vector.broadcast %cst_23 : f32 to vector<1x1x8xf32>
      %c0_24 = arith.constant 0 : index
      %c0_25 = arith.constant 0 : index
      %c0_26 = arith.constant 0 : index
      %38 = vector.load %arg5[%c0_24, %c0_25, %c0_26] : memref<1x1x8xf32, #tpu.memory_space<vmem>>, vector<1x1x8xf32>
      tpu.vector_store %arg5[%c0_24, %c0_25, %c0_26], %37 {strides = array<i32>} : memref<1x1x8xf32, #tpu.memory_space<vmem>>, vector<1x1x8xf32>,
      %cst_27 = arith.constant 0.000000e+00 : f32
      %39 = vector.broadcast %cst_27 : f32 to vector<1x1x8xf32>
      %c0_28 = arith.constant 0 : index
      %c0_29 = arith.constant 0 : index
      %c0_30 = arith.constant 0 : index
      %40 = vector.load %arg6[%c0_28, %c0_29, %c0_30] : memref<1x1x8xf32, #tpu.memory_space<vmem>>, vector<1x1x8xf32>
      tpu.vector_store %arg6[%c0_28, %c0_29, %c0_30], %39 {strides = array<i32>} : memref<1x1x8xf32, #tpu.memory_space<vmem>>, vector<1x1x8xf32>,
    } else {
    }
    %c0 = arith.constant 0 : index
    %c0_1 = arith.constant 0 : index
    %c0_2 = arith.constant 0 : index
    %c0_3 = arith.constant 0 : index
    %c0_4 = arith.constant 0 : index
    %3 = vector.load %arg2[%c0, %c0_1, %c0_2, %c0_3, %c0_4] : memref<1x1x18x18x4xbf16, #tpu.memory_space<vmem>>, vector<1x1x18x18x4xbf16>
    %4 = vector.shape_cast %3 : vector<1x1x18x18x4xbf16> to vector<18x18x4xbf16>
    %5 = vector.extract_strided_slice %4 {offsets = [0, 0, 0], sizes = [16, 16, 4], strides = [1, 1, 1]} : vector<18x18x4xbf16> to vector<16x16x4xbf16>
    %6 = vector.extract_strided_slice %4 {offsets = [0, 1, 0], sizes = [16, 16, 4], strides = [1, 1, 1]} : vector<18x18x4xbf16> to vector<16x16x4xbf16>
    %7 = vector.extract_strided_slice %4 {offsets = [0, 2, 0], sizes = [16, 16, 4], strides = [1, 1, 1]} : vector<18x18x4xbf16> to vector<16x16x4xbf16>
    %8 = vector.extract_strided_slice %4 {offsets = [1, 0, 0], sizes = [16, 16, 4], strides = [1, 1, 1]} : vector<18x18x4xbf16> to vector<16x16x4xbf16>
    %9 = vector.extract_strided_slice %4 {offsets = [1, 1, 0], sizes = [16, 16, 4], strides = [1, 1, 1]} : vector<18x18x4xbf16> to vector<16x16x4xbf16>
    %10 = vector.extract_strided_slice %4 {offsets = [1, 2, 0], sizes = [16, 16, 4], strides = [1, 1, 1]} : vector<18x18x4xbf16> to vector<16x16x4xbf16>
    %11 = vector.extract_strided_slice %4 {offsets = [2, 0, 0], sizes = [16, 16, 4], strides = [1, 1, 1]} : vector<18x18x4xbf16> to vector<16x16x4xbf16>
    %12 = vector.extract_strided_slice %4 {offsets = [2, 1, 0], sizes = [16, 16, 4], strides = [1, 1, 1]} : vector<18x18x4xbf16> to vector<16x16x4xbf16>
    %13 = vector.extract_strided_slice %4 {offsets = [2, 2, 0], sizes = [16, 16, 4], strides = [1, 1, 1]} : vector<18x18x4xbf16> to vector<16x16x4xbf16>
    %14 = tpu.concatenate %5, %6, %7, %8, %9, %10, %11, %12, %13 in 2 : vector<16x16x4xbf16>, vector<16x16x4xbf16>, vector<16x16x4xbf16>, vector<16x16x4xbf16>, vector<16x16x4xbf16>, vector<16x16x4xbf16>, vector<16x16x4xbf16>, vector<16x16x4xbf16>, vector<16x16x4xbf16> -> vector<16x16x36xbf16>
    %15 = vector.shape_cast %14 : vector<16x16x36xbf16> to vector<256x36xbf16>
    %c0_5 = arith.constant 0 : index
    %c0_6 = arith.constant 0 : index
    %16 = vector.load %arg3[%c0_5, %c0_6] : memref<36x8xbf16, #tpu.memory_space<vmem>>, vector<36x8xbf16>
    %cst = arith.constant dense<0.000000e+00> : vector<256x8xf32>
    %17 = tpu.matmul %15, %16, %cst {dimension_numbers = #tpu.dot_dimension_numbers<[1], [0], [0], [1], [0, 0, 1, 1], [], []>} : vector<256x36xbf16>, vector<36x8xbf16>, vector<256x8xf32> -> vector<256x8xf32>
    %18 = arith.truncf %17 : vector<256x8xf32> to vector<256x8xbf16>
    %c0_7 = arith.constant 0 : index
    %c0_8 = arith.constant 0 : index
    %19 = vector.load %arg4[%c0_7, %c0_8] : memref<256x8xbf16, #tpu.memory_space<vmem>>, vector<256x8xbf16>
    tpu.vector_store %arg4[%c0_7, %c0_8], %18 {strides = array<i32>} : memref<256x8xbf16, #tpu.memory_space<vmem>>, vector<256x8xbf16>,
    %c0_9 = arith.constant 0 : index
    %c0_10 = arith.constant 0 : index
    %c0_11 = arith.constant 0 : index
    %20 = vector.load %arg5[%c0_9, %c0_10, %c0_11] : memref<1x1x8xf32, #tpu.memory_space<vmem>>, vector<1x1x8xf32>
    %21 = vector.shape_cast %20 : vector<1x1x8xf32> to vector<1x8xf32>
    %cst_12 = arith.constant dense<0.000000e+00> : vector<8xf32>
    %22 = vector.multi_reduction <add>, %17, %cst_12 [0] : vector<256x8xf32> to vector<8xf32>
    %23 = vector.shape_cast %22 : vector<8xf32> to vector<1x8xf32>
    %24 = arith.addf %21, %23 : vector<1x8xf32>
    %c0_13 = arith.constant 0 : index
    %c0_14 = arith.constant 0 : index
    %c0_15 = arith.constant 0 : index
    %25 = vector.load %arg5[%c0_13, %c0_14, %c0_15] : memref<1x1x8xf32, #tpu.memory_space<vmem>>, vector<1x1x8xf32>
    %26 = vector.shape_cast %25 : vector<1x1x8xf32> to vector<1x8xf32>
    %27 = vector.shape_cast %24 : vector<1x8xf32> to vector<1x1x8xf32>
    tpu.vector_store %arg5[%c0_13, %c0_14, %c0_15], %27 {strides = array<i32>} : memref<1x1x8xf32, #tpu.memory_space<vmem>>, vector<1x1x8xf32>,
    %c0_16 = arith.constant 0 : index
    %c0_17 = arith.constant 0 : index
    %c0_18 = arith.constant 0 : index
    %28 = vector.load %arg6[%c0_16, %c0_17, %c0_18] : memref<1x1x8xf32, #tpu.memory_space<vmem>>, vector<1x1x8xf32>
    %29 = vector.shape_cast %28 : vector<1x1x8xf32> to vector<1x8xf32>
    %30 = arith.mulf %17, %17 : vector<256x8xf32>
    %cst_19 = arith.constant dense<0.000000e+00> : vector<8xf32>
    %31 = vector.multi_reduction <add>, %30, %cst_19 [0] : vector<256x8xf32> to vector<8xf32>
    %32 = vector.shape_cast %31 : vector<8xf32> to vector<1x8xf32>
    %33 = arith.addf %29, %32 : vector<1x8xf32>
    %c0_20 = arith.constant 0 : index
    %c0_21 = arith.constant 0 : index
    %c0_22 = arith.constant 0 : index
    %34 = vector.load %arg6[%c0_20, %c0_21, %c0_22] : memref<1x1x8xf32, #tpu.memory_space<vmem>>, vector<1x1x8xf32>
    %35 = vector.shape_cast %34 : vector<1x1x8xf32> to vector<1x8xf32>
    %36 = vector.shape_cast %33 : vector<1x8xf32> to vector<1x1x8xf32>
    tpu.vector_store %arg6[%c0_20, %c0_21, %c0_22], %36 {strides = array<i32>} : memref<1x1x8xf32, #tpu.memory_space<vmem>>, vector<1x1x8xf32>,
    return
  }
  func.func @transform_0(%arg0: i32, %arg1: i32) -> (i32, i32, i32, i32, i32) {
    %c0_i32 = arith.constant 0 : i32
    %c0_i32_0 = arith.constant 0 : i32
    %c0_i32_1 = arith.constant 0 : i32
    %c0_i32_2 = arith.constant 0 : i32
    return %arg0, %arg1, %c0_i32, %c0_i32_0, %c0_i32_1 : i32, i32, i32, i32, i32
  }
  func.func @transform_1(%arg0: i32, %arg1: i32) -> (i32, i32) {
    %c0_i32 = arith.constant 0 : i32
    %c0_i32_0 = arith.constant 0 : i32
    %c0_i32_1 = arith.constant 0 : i32
    return %c0_i32, %c0_i32_0 : i32, i32
  }
  func.func @transform_2(%arg0: i32, %arg1: i32) -> (i32, i32) {
    %c1_i32 = arith.constant 1 : i32
    %0 = arith.muli %arg0, %c1_i32 : i32
    %1 = arith.addi %0, %arg1 : i32
    %c0_i32 = arith.constant 0 : i32
    %c0_i32_0 = arith.constant 0 : i32
    return %1, %c0_i32 : i32, i32
  }
  func.func @transform_3(%arg0: i32, %arg1: i32) -> (i32, i32, i32) {
    %c0_i32 = arith.constant 0 : i32
    %c0_i32_0 = arith.constant 0 : i32
    %c0_i32_1 = arith.constant 0 : i32
    return %arg0, %c0_i32, %c0_i32_0 : i32, i32, i32
  }
  func.func @transform_4(%arg0: i32, %arg1: i32) -> (i32, i32, i32) {
    %c0_i32 = arith.constant 0 : i32
    %c0_i32_0 = arith.constant 0 : i32
    %c0_i32_1 = arith.constant 0 : i32
    return %arg0, %c0_i32, %c0_i32_0 : i32, i32, i32
  }
}

</mosaic_0001>

<bundles_post_ra>
// kernel: conv2d_block_forward.3
= control target key start
LH: loop header
LB: loop body
LE: loop exit
PB: predicated region body
PF: predicated region fallthrough
CT: control target
= control target key end

     0   :  { %vm348_vm0 = vcmask 64512   ;;  %s1088_s0 = inlined_call_operand.vmem [shape: bf16[512,8], index: 0, kind: input, shape index: {}]   ;;  %s1089_s1 = inlined_call_operand.vmem [shape: f32[1,8], index: 1, kind: input, shape index: {}]   ;;  %s1090_s2 = inlined_call_operand.vmem [shape: f32[1,8], index: 2, kind: input, shape index: {}]   ;;  %s1091_s3 = inlined_call_operand.vmem [shape: f32[512,8], index: 3, kind: output, shape index: {}]  }
   0x1   :  { %v420_v0 = vld [vmem:[%s1088_s0] sm:$0xff]   ;;  %v547_v4 = vld [vmem:[%s1088_s0 + $0x8] sm:$0xff]   ;;  %v548_v5 = vld [vmem:[%s1088_s0 + $0x10] sm:$0xff]  }
   0x2   :  { %v604_v1 = vld [vmem:[%s1089_s1] ss:$0 sm:$0xff]  ;;  %v421_v2 = vunpack.c.l.bf16 %v420_v0  ;;  %v422_v3 = vunpack.c.h.bf16 %v420_v0  ;;  %v549_v6 = vld [vmem:[%s1088_s0 + $0x18] sm:$0xff]   ;;  %v425_v8 = vunpack.c.l.bf16 %v547_v4  ;;  %v426_v9 = vunpack.c.h.bf16 %v547_v4  ;;  %v551_v33 = vld [vmem:[%s1088_s0 + $0x28] sm:$0xff]  }
   0x3   :  { %v618_v7 = vld [vmem:[%s1090_s2] ss:$0 sm:$0xff]  ;;  %v429_v10 = vunpack.c.l.bf16 %v548_v5  ;;  %v430_v11 = vunpack.c.h.bf16 %v548_v5  ;;  %v433_v14 = vunpack.c.l.bf16 %v549_v6  ;;  %v434_v15 = vunpack.c.h.bf16 %v549_v6  ;;  %v552_v34 = vld [vmem:[%s1088_s0 + $0x30] sm:$0xff]   ;;  %v553_v39 = vld [vmem:[%s1088_s0 + $0x38] sm:$0xff]  }
   0x4   :  { %v149_v12 = vmul.f32 %v421_v2, %v604_v1  ;;  %v150_v13 = vmul.f32 %v422_v3, %v604_v1  ;;  %v151_v16 = vmul.f32 %v425_v8, %v604_v1  ;;  %v152_v17 = vmul.f32 %v426_v9, %v604_v1  ;;  %v550_v28 = vld [vmem:[%s1088_s0 + $0x20] sm:$0xff]   ;;  %v555_v6 = vld [vmem:[%s1088_s0 + $0x48] sm:$0xff]   ;;  %v556_v8 = vld [vmem:[%s1088_s0 + $0x50] sm:$0xff]  }
   0x5   :  { %v153_v18 = vmul.f32 %v429_v10, %v604_v1  ;;  %v154_v19 = vmul.f32 %v430_v11, %v604_v1  ;;  %v155_v22 = vmul.f32 %v433_v14, %v604_v1  ;;  %v156_v23 = vmul.f32 %v434_v15, %v604_v1  ;;  %v554_v0 = vld [vmem:[%s1088_s0 + $0x40] sm:$0xff]  }
   0x6   :  { %v220_v20 = vadd.f32 %v618_v7, %v149_v12  ;;  %v221_v21 = vadd.f32 %v618_v7, %v150_v13  ;;  %v222_v24 = vadd.f32 %v618_v7, %v151_v16  ;;  %v223_v25 = vadd.f32 %v618_v7, %v152_v17  ;;  %v557_v13 = vld [vmem:[%s1088_s0 + $0x58] sm:$0xff]  }
   0x7   :  { %v224_v26 = vadd.f32 %v618_v7, %v153_v18  ;;  %v225_v27 = vadd.f32 %v618_v7, %v154_v19  ;;  %v226_v31 = vadd.f32 %v618_v7, %v155_v22  ;;  %v227_v32 = vadd.f32 %v618_v7, %v156_v23 }
   0x8   :  { %v284_v29 = vmax.f32 %v220_v20, 0.0  ;;  %v285_v30 = vmax.f32 %v221_v21, 0.0  ;;  %v286_v35 = vmax.f32 %v222_v24, 0.0  ;;  %v287_v36 = vmax.f32 %v223_v25, 0.0 }
   0x9   :  { %v288_v37 = vmax.f32 %v224_v26, 0.0  ;;  %v289_v38 = vmax.f32 %v225_v27, 0.0  ;;  %v290_v40 = vmax.f32 %v226_v31, 0.0  ;;  %v291_v41 = vmax.f32 %v227_v32, 0.0 }
   0xa   :  { %349 = vst.msk [vmem:[%s1091_s3] sm:$0xff] %vm348_vm0, %v284_v29  ;;  %350 = vst.msk [vmem:[%s1091_s3 + $0x8] sm:$0xff] %vm348_vm0, %v285_v30  ;;  %v437_v42 = vunpack.c.l.bf16 %v550_v28  ;;  %v438_v43 = vunpack.c.h.bf16 %v550_v28  ;;  %v441_v44 = vunpack.c.l.bf16 %v551_v33  ;;  %v442_v45 = vunpack.c.h.bf16 %v551_v33 }
   0xb   :  { %351 = vst.msk [vmem:[%s1091_s3 + $0x10] sm:$0xff] %vm348_vm0, %v286_v35  ;;  %352 = vst.msk [vmem:[%s1091_s3 + $0x18] sm:$0xff] %vm348_vm0, %v287_v36  ;;  %v445_v46 = vunpack.c.l.bf16 %v552_v34  ;;  %v446_v47 = vunpack.c.h.bf16 %v552_v34  ;;  %v449_v50 = vunpack.c.l.bf16 %v553_v39  ;;  %v450_v51 = vunpack.c.h.bf16 %v553_v39 }
   0xc   :  { %353 = vst.msk [vmem:[%s1091_s3 + $0x20] sm:$0xff] %vm348_vm0, %v288_v37  ;;  %354 = vst.msk [vmem:[%s1091_s3 + $0x28] sm:$0xff] %vm348_vm0, %v289_v38  ;;  %v157_v48 = vmul.f32 %v437_v42, %v604_v1  ;;  %v158_v49 = vmul.f32 %v438_v43, %v604_v1  ;;  %v159_v52 = vmul.f32 %v441_v44, %v604_v1  ;;  %v453_v16 = vunpack.c.l.bf16 %v554_v0  ;;  %v558_v38 = vld [vmem:[%s1088_s0 + $0x60] sm:$0xff]   ;;  %v559_v43 = vld [vmem:[%s1088_s0 + $0x68] sm:$0xff]  }
   0xd   :  { %355 = vst.msk [vmem:[%s1091_s3 + $0x30] sm:$0xff] %vm348_vm0, %v290_v40  ;;  %356 = vst.msk [vmem:[%s1091_s3 + $0x38] sm:$0xff] %vm348_vm0, %v291_v41  ;;  %v160_v53 = vmul.f32 %v442_v45, %v604_v1  ;;  %v161_v54 = vmul.f32 %v445_v46, %v604_v1  ;;  %v162_v55 = vmul.f32 %v446_v47, %v604_v1  ;;  %v454_v17 = vunpack.c.h.bf16 %v554_v0  ;;  %v560_v44 = vld [vmem:[%s1088_s0 + $0x70] sm:$0xff]  }
   0xe   :  { %v228_v56 = vadd.f32 %v618_v7, %v157_v48  ;;  %v229_v57 = vadd.f32 %v618_v7, %v158_v49  ;;  %v163_v58 = vmul.f32 %v449_v50, %v604_v1  ;;  %v164_v59 = vmul.f32 %v450_v51, %v604_v1  ;;  %v561_v49 = vld [vmem:[%s1088_s0 + $0x78] sm:$0xff]  }
   0xf   :  { %v230_v60 = vadd.f32 %v618_v7, %v159_v52  ;;  %v231_v61 = vadd.f32 %v618_v7, %v160_v53  ;;  %v232_v62 = vadd.f32 %v618_v7, %v161_v54  ;;  %v233_v63 = vadd.f32 %v618_v7, %v162_v55 }
  0x10   :  { %v292_v2 = vmax.f32 %v228_v56, 0.0  ;;  %v293_v3 = vmax.f32 %v229_v57, 0.0  ;;  %v234_v4 = vadd.f32 %v618_v7, %v163_v58  ;;  %v235_v5 = vadd.f32 %v618_v7, %v164_v59 }
  0x11   :  { %v294_v9 = vmax.f32 %v230_v60, 0.0  ;;  %v295_v10 = vmax.f32 %v231_v61, 0.0  ;;  %v296_v11 = vmax.f32 %v232_v62, 0.0  ;;  %v297_v12 = vmax.f32 %v233_v63, 0.0 }
  0x12   :  { %357 = vst.msk [vmem:[%s1091_s3 + $0x40] sm:$0xff] %vm348_vm0, %v292_v2  ;;  %358 = vst.msk [vmem:[%s1091_s3 + $0x48] sm:$0xff] %vm348_vm0, %v293_v3  ;;  %v298_v14 = vmax.f32 %v234_v4, 0.0  ;;  %v299_v15 = vmax.f32 %v235_v5, 0.0  ;;  %v457_v18 = vunpack.c.l.bf16 %v555_v6  ;;  %v458_v19 = vunpack.c.h.bf16 %v555_v6 }
  0x13   :  { %359 = vst.msk [vmem:[%s1091_s3 + $0x50] sm:$0xff] %vm348_vm0, %v294_v9  ;;  %360 = vst.msk [vmem:[%s1091_s3 + $0x58] sm:$0xff] %vm348_vm0, %v295_v10  ;;  %v461_v20 = vunpack.c.l.bf16 %v556_v8  ;;  %v462_v21 = vunpack.c.h.bf16 %v556_v8  ;;  %v165_v22 = vmul.f32 %v453_v16, %v604_v1  ;;  %v166_v23 = vmul.f32 %v454_v17, %v604_v1  ;;  %v563_v17 = vld [vmem:[%s1088_s0 + $0x88] sm:$0xff]  }
  0x14   :  { %361 = vst.msk [vmem:[%s1091_s3 + $0x60] sm:$0xff] %vm348_vm0, %v296_v11  ;;  %362 = vst.msk [vmem:[%s1091_s3 + $0x68] sm:$0xff] %vm348_vm0, %v297_v12  ;;  %v465_v24 = vunpack.c.l.bf16 %v557_v13  ;;  %v466_v25 = vunpack.c.h.bf16 %v557_v13  ;;  %v167_v26 = vmul.f32 %v457_v18, %v604_v1  ;;  %v168_v27 = vmul.f32 %v458_v19, %v604_v1  ;;  %v562_v12 = vld [vmem:[%s1088_s0 + $0x80] sm:$0xff]   ;;  %v564_v18 = vld [vmem:[%s1088_s0 + $0x90] sm:$0xff]  }
  0x15   :  { %363 = vst.msk [vmem:[%s1091_s3 + $0x70] sm:$0xff] %vm348_vm0, %v298_v14  ;;  %364 = vst.msk [vmem:[%s1091_s3 + $0x78] sm:$0xff] %vm348_vm0, %v299_v15  ;;  %v169_v28 = vmul.f32 %v461_v20, %v604_v1  ;;  %v170_v29 = vmul.f32 %v462_v21, %v604_v1  ;;  %v236_v30 = vadd.f32 %v618_v7, %v165_v22  ;;  %v469_v52 = vunpack.c.l.bf16 %v558_v38 }
  0x16   :  { %v237_v31 = vadd.f32 %v618_v7, %v166_v23  ;;  %v171_v32 = vmul.f32 %v465_v24, %v604_v1  ;;  %v172_v33 = vmul.f32 %v466_v25, %v604_v1  ;;  %v238_v34 = vadd.f32 %v618_v7, %v167_v26  ;;  %v565_v23 = vld [vmem:[%s1088_s0 + $0x98] sm:$0xff]  }
  0x17   :  { %v239_v35 = vadd.f32 %v618_v7, %v168_v27  ;;  %v240_v36 = vadd.f32 %v618_v7, %v169_v28  ;;  %v241_v37 = vadd.f32 %v618_v7, %v170_v29  ;;  %v300_v39 = vmax.f32 %v236_v30, 0.0 }
  0x18   :  { %v301_v40 = vmax.f32 %v237_v31, 0.0  ;;  %v242_v41 = vadd.f32 %v618_v7, %v171_v32  ;;  %v243_v42 = vadd.f32 %v618_v7, %v172_v33  ;;  %v302_v45 = vmax.f32 %v238_v34, 0.0 }
  0x19   :  { %v303_v46 = vmax.f32 %v239_v35, 0.0  ;;  %v304_v47 = vmax.f32 %v240_v36, 0.0  ;;  %v305_v48 = vmax.f32 %v241_v37, 0.0  ;;  %365 = vst.msk [vmem:[%s1091_s3 + $0x80] sm:$0xff] %vm348_vm0, %v300_v39  ;;  %v470_v53 = vunpack.c.h.bf16 %v558_v38 }
  0x1a   :  { %366 = vst.msk [vmem:[%s1091_s3 + $0x88] sm:$0xff] %vm348_vm0, %v301_v40  ;;  %v306_v50 = vmax.f32 %v242_v41, 0.0  ;;  %v307_v51 = vmax.f32 %v243_v42, 0.0  ;;  %367 = vst.msk [vmem:[%s1091_s3 + $0x90] sm:$0xff] %vm348_vm0, %v302_v45  ;;  %v473_v54 = vunpack.c.l.bf16 %v559_v43  ;;  %v474_v55 = vunpack.c.h.bf16 %v559_v43 }
  0x1b   :  { %368 = vst.msk [vmem:[%s1091_s3 + $0x98] sm:$0xff] %vm348_vm0, %v303_v46  ;;  %369 = vst.msk [vmem:[%s1091_s3 + $0xa0] sm:$0xff] %vm348_vm0, %v304_v47  ;;  %v477_v56 = vunpack.c.l.bf16 %v560_v44  ;;  %v478_v57 = vunpack.c.h.bf16 %v560_v44  ;;  %v173_v58 = vmul.f32 %v469_v52, %v604_v1  ;;  %v174_v59 = vmul.f32 %v470_v53, %v604_v1  ;;  %v567_v53 = vld [vmem:[%s1088_s0 + $0xa8] sm:$0xff]  }
  0x1c   :  { %370 = vst.msk [vmem:[%s1091_s3 + $0xa8] sm:$0xff] %vm348_vm0, %v305_v48  ;;  %371 = vst.msk [vmem:[%s1091_s3 + $0xb0] sm:$0xff] %vm348_vm0, %v306_v50  ;;  %v481_v60 = vunpack.c.l.bf16 %v561_v49  ;;  %v482_v61 = vunpack.c.h.bf16 %v561_v49  ;;  %v175_v62 = vmul.f32 %v473_v54, %v604_v1  ;;  %v176_v63 = vmul.f32 %v474_v55, %v604_v1  ;;  %v566_v48 = vld [vmem:[%s1088_s0 + $0xa0] sm:$0xff]   ;;  %v568_v54 = vld [vmem:[%s1088_s0 + $0xb0] sm:$0xff]  }
  0x1d   :  { %372 = vst.msk [vmem:[%s1091_s3 + $0xb8] sm:$0xff] %vm348_vm0, %v307_v51  ;;  %v177_v0 = vmul.f32 %v477_v56, %v604_v1  ;;  %v178_v2 = vmul.f32 %v478_v57, %v604_v1  ;;  %v244_v3 = vadd.f32 %v618_v7, %v173_v58  ;;  %v245_v4 = vadd.f32 %v618_v7, %v174_v59  ;;  %v569_v59 = vld [vmem:[%s1088_s0 + $0xb8] sm:$0xff]  }
  0x1e   :  { %v179_v5 = vmul.f32 %v481_v60, %v604_v1  ;;  %v180_v6 = vmul.f32 %v482_v61, %v604_v1  ;;  %v246_v8 = vadd.f32 %v618_v7, %v175_v62  ;;  %v247_v9 = vadd.f32 %v618_v7, %v176_v63 }
  0x1f   :  { %v248_v10 = vadd.f32 %v618_v7, %v177_v0  ;;  %v249_v11 = vadd.f32 %v618_v7, %v178_v2  ;;  %v308_v13 = vmax.f32 %v244_v3, 0.0  ;;  %v309_v14 = vmax.f32 %v245_v4, 0.0 }
  0x20   :  { %v250_v15 = vadd.f32 %v618_v7, %v179_v5  ;;  %v251_v16 = vadd.f32 %v618_v7, %v180_v6  ;;  %v310_v19 = vmax.f32 %v246_v8, 0.0  ;;  %v311_v20 = vmax.f32 %v247_v9, 0.0 }
  0x21   :  { %v312_v21 = vmax.f32 %v248_v10, 0.0  ;;  %v313_v22 = vmax.f32 %v249_v11, 0.0  ;;  %373 = vst.msk [vmem:[%s1091_s3 + $0xc0] sm:$0xff] %vm348_vm0, %v308_v13  ;;  %374 = vst.msk [vmem:[%s1091_s3 + $0xc8] sm:$0xff] %vm348_vm0, %v309_v14  ;;  %v485_v26 = vunpack.c.l.bf16 %v562_v12  ;;  %v486_v27 = vunpack.c.h.bf16 %v562_v12 }
  0x22   :  { %v314_v24 = vmax.f32 %v250_v15, 0.0  ;;  %v315_v25 = vmax.f32 %v251_v16, 0.0  ;;  %375 = vst.msk [vmem:[%s1091_s3 + $0xd0] sm:$0xff] %vm348_vm0, %v310_v19  ;;  %376 = vst.msk [vmem:[%s1091_s3 + $0xd8] sm:$0xff] %vm348_vm0, %v311_v20  ;;  %v489_v28 = vunpack.c.l.bf16 %v563_v17  ;;  %v490_v29 = vunpack.c.h.bf16 %v563_v17 }
  0x23   :  { %377 = vst.msk [vmem:[%s1091_s3 + $0xe0] sm:$0xff] %vm348_vm0, %v312_v21  ;;  %378 = vst.msk [vmem:[%s1091_s3 + $0xe8] sm:$0xff] %vm348_vm0, %v313_v22  ;;  %v493_v30 = vunpack.c.l.bf16 %v564_v18  ;;  %v494_v31 = vunpack.c.h.bf16 %v564_v18  ;;  %v181_v32 = vmul.f32 %v485_v26, %v604_v1  ;;  %v182_v33 = vmul.f32 %v486_v27, %v604_v1  ;;  %v570_v22 = vld [vmem:[%s1088_s0 + $0xc0] sm:$0xff]   ;;  %v571_v27 = vld [vmem:[%s1088_s0 + $0xc8] sm:$0xff]  }
  0x24   :  { %379 = vst.msk [vmem:[%s1091_s3 + $0xf0] sm:$0xff] %vm348_vm0, %v314_v24  ;;  %380 = vst.msk [vmem:[%s1091_s3 + $0xf8] sm:$0xff] %vm348_vm0, %v315_v25  ;;  %v497_v34 = vunpack.c.l.bf16 %v565_v23  ;;  %v498_v35 = vunpack.c.h.bf16 %v565_v23  ;;  %v183_v36 = vmul.f32 %v489_v28, %v604_v1  ;;  %v184_v37 = vmul.f32 %v490_v29, %v604_v1  ;;  %v572_v28 = vld [vmem:[%s1088_s0 + $0xd0] sm:$0xff]  }
  0x25   :  { %v185_v38 = vmul.f32 %v493_v30, %v604_v1  ;;  %v186_v39 = vmul.f32 %v494_v31, %v604_v1  ;;  %v252_v40 = vadd.f32 %v618_v7, %v181_v32  ;;  %v253_v41 = vadd.f32 %v618_v7, %v182_v33  ;;  %v573_v33 = vld [vmem:[%s1088_s0 + $0xd8] sm:$0xff]  }
  0x26   :  { %v187_v42 = vmul.f32 %v497_v34, %v604_v1  ;;  %v188_v43 = vmul.f32 %v498_v35, %v604_v1  ;;  %v254_v44 = vadd.f32 %v618_v7, %v183_v36  ;;  %v255_v45 = vadd.f32 %v618_v7, %v184_v37 }
  0x27   :  { %v256_v46 = vadd.f32 %v618_v7, %v185_v38  ;;  %v257_v47 = vadd.f32 %v618_v7, %v186_v39  ;;  %v316_v49 = vmax.f32 %v252_v40, 0.0  ;;  %v317_v50 = vmax.f32 %v253_v41, 0.0 }
  0x28   :  { %v258_v51 = vadd.f32 %v618_v7, %v187_v42  ;;  %v259_v52 = vadd.f32 %v618_v7, %v188_v43  ;;  %v318_v55 = vmax.f32 %v254_v44, 0.0  ;;  %v319_v56 = vmax.f32 %v255_v45, 0.0 }
  0x29   :  { %v320_v57 = vmax.f32 %v256_v46, 0.0  ;;  %v321_v58 = vmax.f32 %v257_v47, 0.0  ;;  %381 = vst.msk [vmem:[%s1091_s3 + $0x100] sm:$0xff] %vm348_vm0, %v316_v49  ;;  %382 = vst.msk [vmem:[%s1091_s3 + $0x108] sm:$0xff] %vm348_vm0, %v317_v50  ;;  %v501_v62 = vunpack.c.l.bf16 %v566_v48  ;;  %v502_v63 = vunpack.c.h.bf16 %v566_v48 }
  0x2a   :  { %v322_v60 = vmax.f32 %v258_v51, 0.0  ;;  %v323_v61 = vmax.f32 %v259_v52, 0.0  ;;  %383 = vst.msk [vmem:[%s1091_s3 + $0x110] sm:$0xff] %vm348_vm0, %v318_v55  ;;  %384 = vst.msk [vmem:[%s1091_s3 + $0x118] sm:$0xff] %vm348_vm0, %v319_v56  ;;  %v505_v0 = vunpack.c.l.bf16 %v567_v53  ;;  %v506_v2 = vunpack.c.h.bf16 %v567_v53 }
  0x2b   :  { %385 = vst.msk [vmem:[%s1091_s3 + $0x120] sm:$0xff] %vm348_vm0, %v320_v57  ;;  %386 = vst.msk [vmem:[%s1091_s3 + $0x128] sm:$0xff] %vm348_vm0, %v321_v58  ;;  %v509_v3 = vunpack.c.l.bf16 %v568_v54  ;;  %v510_v4 = vunpack.c.h.bf16 %v568_v54  ;;  %v189_v5 = vmul.f32 %v501_v62, %v604_v1  ;;  %v190_v6 = vmul.f32 %v502_v63, %v604_v1  ;;  %v574_v58 = vld [vmem:[%s1088_s0 + $0xe0] sm:$0xff]   ;;  %v575_v63 = vld [vmem:[%s1088_s0 + $0xe8] sm:$0xff]  }
  0x2c   :  { %387 = vst.msk [vmem:[%s1091_s3 + $0x130] sm:$0xff] %vm348_vm0, %v322_v60  ;;  %388 = vst.msk [vmem:[%s1091_s3 + $0x138] sm:$0xff] %vm348_vm0, %v323_v61  ;;  %v513_v8 = vunpack.c.l.bf16 %v569_v59  ;;  %v514_v9 = vunpack.c.h.bf16 %v569_v59  ;;  %v191_v10 = vmul.f32 %v505_v0, %v604_v1  ;;  %v192_v11 = vmul.f32 %v506_v2, %v604_v1  ;;  %v576_v0 = vld [vmem:[%s1088_s0 + $0xf0] sm:$0xff]  }
  0x2d   :  { %v193_v12 = vmul.f32 %v509_v3, %v604_v1  ;;  %v194_v13 = vmul.f32 %v510_v4, %v604_v1  ;;  %v260_v14 = vadd.f32 %v618_v7, %v189_v5  ;;  %v261_v15 = vadd.f32 %v618_v7, %v190_v6  ;;  %v577_v6 = vld [vmem:[%s1088_s0 + $0xf8] sm:$0xff]  }
  0x2e   :  { %v195_v16 = vmul.f32 %v513_v8, %v604_v1  ;;  %v196_v17 = vmul.f32 %v514_v9, %v604_v1  ;;  %v262_v18 = vadd.f32 %v618_v7, %v191_v10  ;;  %v263_v19 = vadd.f32 %v618_v7, %v192_v11 }
  0x2f   :  { %v264_v20 = vadd.f32 %v618_v7, %v193_v12  ;;  %v265_v21 = vadd.f32 %v618_v7, %v194_v13  ;;  %v324_v23 = vmax.f32 %v260_v14, 0.0  ;;  %v325_v24 = vmax.f32 %v261_v15, 0.0 }
  0x30   :  { %v266_v25 = vadd.f32 %v618_v7, %v195_v16  ;;  %v267_v26 = vadd.f32 %v618_v7, %v196_v17  ;;  %v326_v29 = vmax.f32 %v262_v18, 0.0  ;;  %v327_v30 = vmax.f32 %v263_v19, 0.0 }
  0x31   :  { %v328_v31 = vmax.f32 %v264_v20, 0.0  ;;  %v329_v32 = vmax.f32 %v265_v21, 0.0  ;;  %389 = vst.msk [vmem:[%s1091_s3 + $0x140] sm:$0xff] %vm348_vm0, %v324_v23  ;;  %390 = vst.msk [vmem:[%s1091_s3 + $0x148] sm:$0xff] %vm348_vm0, %v325_v24  ;;  %v517_v36 = vunpack.c.l.bf16 %v570_v22  ;;  %v518_v37 = vunpack.c.h.bf16 %v570_v22 }
  0x32   :  { %v330_v34 = vmax.f32 %v266_v25, 0.0  ;;  %v331_v35 = vmax.f32 %v267_v26, 0.0  ;;  %391 = vst.msk [vmem:[%s1091_s3 + $0x150] sm:$0xff] %vm348_vm0, %v326_v29  ;;  %392 = vst.msk [vmem:[%s1091_s3 + $0x158] sm:$0xff] %vm348_vm0, %v327_v30  ;;  %v521_v38 = vunpack.c.l.bf16 %v571_v27  ;;  %v522_v39 = vunpack.c.h.bf16 %v571_v27 }
  0x33   :  { %393 = vst.msk [vmem:[%s1091_s3 + $0x160] sm:$0xff] %vm348_vm0, %v328_v31  ;;  %394 = vst.msk [vmem:[%s1091_s3 + $0x168] sm:$0xff] %vm348_vm0, %v329_v32  ;;  %v525_v40 = vunpack.c.l.bf16 %v572_v28  ;;  %v526_v41 = vunpack.c.h.bf16 %v572_v28  ;;  %v197_v42 = vmul.f32 %v517_v36, %v604_v1  ;;  %v198_v43 = vmul.f32 %v518_v37, %v604_v1 }
  0x34   :  { %395 = vst.msk [vmem:[%s1091_s3 + $0x170] sm:$0xff] %vm348_vm0, %v330_v34  ;;  %396 = vst.msk [vmem:[%s1091_s3 + $0x178] sm:$0xff] %vm348_vm0, %v331_v35  ;;  %v529_v44 = vunpack.c.l.bf16 %v573_v33  ;;  %v530_v45 = vunpack.c.h.bf16 %v573_v33  ;;  %v199_v46 = vmul.f32 %v521_v38, %v604_v1  ;;  %v200_v47 = vmul.f32 %v522_v39, %v604_v1 }
  0x35   :  { %v201_v48 = vmul.f32 %v525_v40, %v604_v1  ;;  %v202_v49 = vmul.f32 %v526_v41, %v604_v1  ;;  %v268_v50 = vadd.f32 %v618_v7, %v197_v42  ;;  %v269_v51 = vadd.f32 %v618_v7, %v198_v43 }
  0x36   :  { %v203_v52 = vmul.f32 %v529_v44, %v604_v1  ;;  %v204_v53 = vmul.f32 %v530_v45, %v604_v1  ;;  %v270_v54 = vadd.f32 %v618_v7, %v199_v46  ;;  %v271_v55 = vadd.f32 %v618_v7, %v200_v47 }
  0x37   :  { %v272_v56 = vadd.f32 %v618_v7, %v201_v48  ;;  %v273_v57 = vadd.f32 %v618_v7, %v202_v49  ;;  %v332_v59 = vmax.f32 %v268_v50, 0.0  ;;  %v333_v60 = vmax.f32 %v269_v51, 0.0 }
  0x38   :  { %v274_v61 = vadd.f32 %v618_v7, %v203_v52  ;;  %v275_v62 = vadd.f32 %v618_v7, %v204_v53  ;;  %v334_v2 = vmax.f32 %v270_v54, 0.0  ;;  %v335_v3 = vmax.f32 %v271_v55, 0.0 }
  0x39   :  { %v336_v4 = vmax.f32 %v272_v56, 0.0  ;;  %v337_v5 = vmax.f32 %v273_v57, 0.0  ;;  %397 = vst.msk [vmem:[%s1091_s3 + $0x180] sm:$0xff] %vm348_vm0, %v332_v59  ;;  %398 = vst.msk [vmem:[%s1091_s3 + $0x188] sm:$0xff] %vm348_vm0, %v333_v60  ;;  %v533_v10 = vunpack.c.l.bf16 %v574_v58  ;;  %v534_v11 = vunpack.c.h.bf16 %v574_v58 }
  0x3a   :  { %v338_v8 = vmax.f32 %v274_v61, 0.0  ;;  %v339_v9 = vmax.f32 %v275_v62, 0.0  ;;  %399 = vst.msk [vmem:[%s1091_s3 + $0x190] sm:$0xff] %vm348_vm0, %v334_v2  ;;  %400 = vst.msk [vmem:[%s1091_s3 + $0x198] sm:$0xff] %vm348_vm0, %v335_v3  ;;  %v537_v12 = vunpack.c.l.bf16 %v575_v63  ;;  %v538_v13 = vunpack.c.h.bf16 %v575_v63 }
  0x3b   :  { %401 = vst.msk [vmem:[%s1091_s3 + $0x1a0] sm:$0xff] %vm348_vm0, %v336_v4  ;;  %402 = vst.msk [vmem:[%s1091_s3 + $0x1a8] sm:$0xff] %vm348_vm0, %v337_v5  ;;  %v541_v14 = vunpack.c.l.bf16 %v576_v0  ;;  %v542_v15 = vunpack.c.h.bf16 %v576_v0  ;;  %v205_v16 = vmul.f32 %v533_v10, %v604_v1  ;;  %v206_v17 = vmul.f32 %v534_v11, %v604_v1 }
  0x3c   :  { %403 = vst.msk [vmem:[%s1091_s3 + $0x1b0] sm:$0xff] %vm348_vm0, %v338_v8  ;;  %404 = vst.msk [vmem:[%s1091_s3 + $0x1b8] sm:$0xff] %vm348_vm0, %v339_v9  ;;  %v545_v18 = vunpack.c.l.bf16 %v577_v6  ;;  %v546_v19 = vunpack.c.h.bf16 %v577_v6  ;;  %v207_v20 = vmul.f32 %v537_v12, %v604_v1  ;;  %v208_v21 = vmul.f32 %v538_v13, %v604_v1 }
  0x3d   :  { %v209_v22 = vmul.f32 %v541_v14, %v604_v1  ;;  %v210_v23 = vmul.f32 %v542_v15, %v604_v1  ;;  %v276_v24 = vadd.f32 %v618_v7, %v205_v16  ;;  %v277_v25 = vadd.f32 %v618_v7, %v206_v17 }
  0x3e   :  { %v211_v26 = vmul.f32 %v545_v18, %v604_v1  ;;  %v212_v27 = vmul.f32 %v546_v19, %v604_v1  ;;  %v278_v28 = vadd.f32 %v618_v7, %v207_v20  ;;  %v279_v29 = vadd.f32 %v618_v7, %v208_v21 }
  0x3f   :  { %v280_v30 = vadd.f32 %v618_v7, %v209_v22  ;;  %v281_v31 = vadd.f32 %v618_v7, %v210_v23  ;;  %v340_v32 = vmax.f32 %v276_v24, 0.0  ;;  %v341_v33 = vmax.f32 %v277_v25, 0.0 }
  0x40   :  { %v282_v34 = vadd.f32 %v618_v7, %v211_v26  ;;  %v283_v35 = vadd.f32 %v618_v7, %v212_v27  ;;  %v342_v36 = vmax.f32 %v278_v28, 0.0  ;;  %v343_v37 = vmax.f32 %v279_v29, 0.0 }
  0x41   :  { %v344_v38 = vmax.f32 %v280_v30, 0.0  ;;  %v345_v39 = vmax.f32 %v281_v31, 0.0  ;;  %405 = vst.msk [vmem:[%s1091_s3 + $0x1c0] sm:$0xff] %vm348_vm0, %v340_v32  ;;  %406 = vst.msk [vmem:[%s1091_s3 + $0x1c8] sm:$0xff] %vm348_vm0, %v341_v33 }
  0x42   :  { %v346_v1 = vmax.f32 %v282_v34, 0.0  ;;  %v347_v40 = vmax.f32 %v283_v35, 0.0  ;;  %407 = vst.msk [vmem:[%s1091_s3 + $0x1d0] sm:$0xff] %vm348_vm0, %v342_v36  ;;  %408 = vst.msk [vmem:[%s1091_s3 + $0x1d8] sm:$0xff] %vm348_vm0, %v343_v37 }
  0x43   :  { %409 = vst.msk [vmem:[%s1091_s3 + $0x1e0] sm:$0xff] %vm348_vm0, %v344_v38  ;;  %410 = vst.msk [vmem:[%s1091_s3 + $0x1e8] sm:$0xff] %vm348_vm0, %v345_v39 }
  0x44   :  { %411 = vst.msk [vmem:[%s1091_s3 + $0x1f0] sm:$0xff] %vm348_vm0, %v346_v1  ;;  %412 = vst.msk [vmem:[%s1091_s3 + $0x1f8] sm:$0xff] %vm348_vm0, %v347_v40 }

// kernel: conv2d_block_forward.2
= control target key start
LH: loop header
LB: loop body
LE: loop exit
PB: predicated region body
PF: predicated region fallthrough
CT: control target
= control target key end

     0   :  { %s2253_s15 = smov 0   ;;  %s2255_s16 = smov 0   ;;  %s2933_s0 = inlined_call_operand.vmem [shape: bf16[2,1,18,18,4], index: 0, kind: input, shape index: {}]   ;;  %s2934_s1 = inlined_call_operand.vmem [shape: bf16[36,8], index: 1, kind: input, shape index: {}]   ;;  %s2935_s2 = inlined_call_operand.vmem [shape: bf16[512,8], index: 2, kind: output, shape index: {0}]   ;;  %s2936_s3 = inlined_call_operand.vmem [shape: f32[2,1,8], index: 3, kind: output, shape index: {1}]   ;;  %s2937_s4 = inlined_call_operand.vmem [shape: f32[2,1,8], index: 4, kind: output, shape index: {2}]  }
   0x1   :  { %s2257_s17 = smov 0  }
   0x2 LB: > { %s27_s18 = sadd.s32 1, %s2213_s16  ;;  %p1932_p0 = scmp.ge.s32.totalorder %s2217_s17, 1  ;;  %s2217_s17 = sphi %s2257_s17, %s15_s17   ;;  %s2213_s16 = sphi %s2255_s16, %s2939_s16   ;;  %s2209_s15 = sphi %s2253_s15, %s2938_s15  }
   0x3   : > { %p29_p1 = scmp.ge.s32.totalorder %s27_s18, 2  ;;  %p187_p2 = scmp.lt.s32.totalorder %s2217_s17, 3 }
   0x5   : > { %s2941_s18 = smov (%p29_p1, %s27_s18), 0  ;;  %p188_p3 = pnand %p1932_p0, %p187_p2 }
   0x6   : > { %p224_p4 = scmp.lt.s32.totalorder (!%p188_p3), %s2209_s15, 1  ;;  %vm662_vm0 = vcmask (!%p188_p3), 1046528   ;;  %s2219_s24 = smov (!%p188_p3), 12   ;;  %vm437_vm1 = vsmask.f32 (!%p188_p3), 7424  ;;  %v2176_v44 = vld [vmem:[%s2934_s1] sm:$0xff] (!%p188_p3)  }
   0x7   : > { %191 = sbr.rel (%p188_p3) target bundleno = 628 (0x274), region = 28  ;;  %s2220_s25 = smov (!%p188_p3), 20   ;;  %2076 = vmatprep.subr.bf16.mxu0 (!%p188_p3), %v2176_v44  ;;  %v2178_v46 = vld [vmem:[%s2934_s1 + $0x8] sm:$0xff] (!%p188_p3)   ;;  %2114 = vmatprep.subr.bf16.mxu1 (!%p188_p3), %v2176_v44  ;;  %v2180_v50 = vld [vmem:[%s2934_s1 + $0x10] ss:$0 sps:$4 sm:$0x33] (!%p188_p3)  }
   0x8   : > { %s2221_s26 = smov (!%p188_p3), 8   ;;  %s2222_s27 = smov (!%p188_p3), 4   ;;  %2077 = vmatpush3.bf16.msra.mxu0 (!%p188_p3), %v2176_v44  ;;  %2117 = vmatpush3.bf16.msra.mxu1 (!%p188_p3), %v2176_v44  ;;  %vm1298_vm2 = vcmask (!%p188_p3), 1041408   ;;  %vm981_vm3 = vcmask (!%p188_p3), 31744   ;;  %vm1014_vm4 = vcmask (!%p188_p3), 64512   ;;  %vm1047_vm5 = vcmask (!%p188_p3), 97280  }
   0x9   : > { %s2223_s28 = smov (!%p188_p3), 16   ;;  %s2224_s5 = smov (!%p188_p3), 24   ;;  %2078 = vmatprep.subr.bf16.mxu0 (!%p188_p3), %v2178_v46  ;;  %2115 = vmatprep.subr.bf16.mxu1 (!%p188_p3), %v2178_v46  ;;  %v1300_v54 = vsel (!%p188_p3), %vm1298_vm2, %v2180_v50, 0  ;;  %vm1080_vm6 = vcmask (!%p188_p3), 130048   ;;  %vm1113_vm7 = vcmask (!%p188_p3), 162816   ;;  %vm1146_vm8 = vcmask (!%p188_p3), 195584  }
   0xa   : > { %s2225_s8 = smov (!%p188_p3), 28   ;;  %s2226_s11 = smov (!%p188_p3), 32   ;;  %vm1179_vm9 = vcmask (!%p188_p3), 228352   ;;  %vm1212_vm10 = vcmask (!%p188_p3), 261120   ;;  %vm1265_vm11 = vcmask (!%p188_p3), 293888   ;;  %vm1591_vm12 = vcmask (!%p188_p3), 60416  }
   0xb   : > { %s1934_s12 = sshll.u32 (!%p188_p3), %s2209_s15, 5  ;;  %vm252_vm13 = vcmask (!%p188_p3), 57344  }
   0xc   : > { %2079 = vmatpush3.bf16.msra.mxu0 (!%p188_p3), %v2178_v46  ;;  %2118 = vmatpush3.bf16.msra.mxu1 (!%p188_p3), %v2178_v46  ;;  %p235_p5 = scmp.lt.s32.totalorder (!%p188_p3), %s1934_s12, 63 }
   0xd   : > { %2120 = vmatprep.subr.msk.bf16.mxu0 (!%p188_p3), %vm1298_vm2, %v2180_v50  ;;  %2121 = vmatprep.subr.msk.bf16.mxu1 (!%p188_p3), %vm1298_vm2, %v2180_v50 }
   0xe   : > { %s2275_s19 = scalar_select %p224_p4, %s2209_s15, 1 }
   0xf   : > { %s2943_s12 = smov (!%p235_p5, %s1934_s12), 63 }
  0x10   : > { %s2122_s20 = smul.u32 216, %s2275_s19  ;;  %2081 = vmatpush3.bf16.msra.mxu0 %v1300_v54  ;;  %2119 = vmatpush3.bf16.msra.mxu1 %v1300_v54  ;;  %s1935_s13 = sshll.u32 %s2943_s12, 2 }
  0x12   : > { %s2281_s23 = scalar_lea.vmem %s2933_s0, %s2122_s20  ;;  %s2757_s20 = scalar_lea.vmem %s2935_s2, %s1935_s13 }
  0x13   : > { %v2284_v0 = vld [vmem:[%s2281_s23 + $0x18] sm:$0xff]   ;;  %v2287_v1 = vld [vmem:[%s2281_s23 + $0xc] sm:$0xff]   ;;  %v2158_v2 = vld [vmem:[%s2281_s23 + $0x14] ss:$0 sps:$4 sm:$0x11]  }
  0x14   : > { %750 = vrot.lane.b32.xlu1 %v2284_v0, %s2219_s24  ;;  %v2293_v3 = vld [vmem:[%s2281_s23] sm:$0xff]   ;;  %748 = vrot.lane.b32.xlu0 %v2287_v1, %s2219_s24  ;;  %v666_v4 = vrot.slane %v2287_v1, 1  ;;  %v667_v5 = vrot.slane %v2158_v2, 1  ;;  %v2160_v6 = vld [vmem:[%s2281_s23 + $0x8] ss:$0 sps:$4 sm:$0x11]  }
  0x15   : > { %v663_v7 = vrot.slane %v2293_v3, 1  ;;  %v439_v8 = vshrl.u32 %v2293_v3, 16  ;;  %v441_v9 = vshll.u32 %v2293_v3, 16  ;;  %v451_v10 = vshrl.u32 %v2287_v1, 16  ;;  %v2313_v30 = vld [vmem:[%s2281_s23 + $0x24] sm:$0xff]   ;;  %v2343_v49 = vld [vmem:[%s2281_s23 + $0x30] sm:$0xff]  }
  0x16   : > { %v668_v11 = vsel %vm662_vm0, %v666_v4, %v667_v5  ;;  %v664_v12 = vrot.slane %v2160_v6, 1  ;;  %v446_v13 = vshll.u32 %v2160_v6, 16  ;;  %v2161_v14 = vld [vmem:[%s2281_s23 + $0x20] ss:$0 sps:$4 sm:$0x11]   ;;  %v453_v15 = vshll.u32 %v2287_v1, 16 }
  0x17   : > { %v443_v16 = vrot.slane %v441_v9, 1  ;;  %v458_v17 = vshll.u32 %v2158_v2, 16  ;;  %v465_v18 = vshll.u32 %v2284_v0, 16  ;;  %v669_v23 = vrot.slane %v2284_v0, 1  ;;  %v2359_v60 = vld [vmem:[%s2281_s23 + $0x3c] sm:$0xff]  }
  0x18   : > { %830 = vrot.lane.b32.xlu0 %v668_v11, %s2220_s25  ;;  %v665_v19 = vsel %vm662_vm0, %v663_v7, %v664_v12  ;;  %v448_v20 = vrot.slane %v446_v13, 1  ;;  %v455_v21 = vrot.slane %v453_v15, 1  ;;  %v463_v25 = vshrl.u32 %v2284_v0, 16  ;;  %v2163_v33 = vld [vmem:[%s2281_s23 + $0x2c] ss:$0 sps:$4 sm:$0x11]  }
  0x19   : > { %711 = vrot.lane.b32.xlu1 %v665_v19, %s2221_s26  ;;  %v444_v22 = vor.u32 %v443_v16, %v439_v8  ;;  %v460_v24 = vrot.slane %v458_v17, 1  ;;  %v670_v26 = vrot.slane %v2161_v14, 1  ;;  %v467_v28 = vrot.slane %v465_v18, 1  ;;  %v2165_v51 = vld [vmem:[%s2281_s23 + $0x38] ss:$0 sps:$4 sm:$0x11]  }
  0x1a   : > { %v456_v27 = vor.u32 %v455_v21, %v451_v10  ;;  %v470_v29 = vshll.u32 %v2161_v14, 16  ;;  %v477_v37 = vshll.u32 %v2313_v30, 16  ;;  %v475_v39 = vshrl.u32 %v2313_v30, 16  ;;  %v2167_v2 = vld [vmem:[%s2281_s23 + $0x44] ss:$0 sps:$4 sm:$0x11]  }
  0x1b   : > { %v449_v31 = vsel %vm437_vm1, %v444_v22, %v448_v20  ;;  %v671_v34 = vsel %vm662_vm0, %v669_v23, %v670_v26  ;;  %v468_v35 = vor.u32 %v467_v28, %v463_v25  ;;  %v482_v41 = vshll.u32 %v2163_v33, 16  ;;  %v2384_v14 = vld [vmem:[%s2281_s23 + $0x48] sm:$0xff]   ;;  %v2169_v16 = vld [vmem:[%s2281_s23 + $0x50] ss:$0 sps:$4 sm:$0x11]   ;;  %v2397_v23 = vld [vmem:[%s2281_s23 + $0x54] sm:$0xff]  }
  0x1c   : > { %630 = vrot.lane.b32.xlu0 %v449_v31, %s2222_s27  ;;  %v461_v32 = vsel %vm437_vm1, %v456_v27, %v460_v24  ;;  %v472_v36 = vrot.slane %v470_v29, 1  ;;  %v479_v40 = vrot.slane %v477_v37, 1  ;;  %v672_v47 = vrot.slane %v2313_v30, 1  ;;  %v2171_v27 = vld [vmem:[%s2281_s23 + $0x5c] ss:$0 sps:$4 sm:$0x11]  }
  0x1d   : > { %713 = vrot.lane.b32.xlu1 %v668_v11, %s2221_s26  ;;  %v484_v43 = vrot.slane %v482_v41, 1  ;;  %v673_v48 = vrot.slane %v2163_v33, 1  ;;  %v489_v53 = vshll.u32 %v2343_v49, 16  ;;  %v487_v55 = vshrl.u32 %v2343_v49, 16 }
  0x1e   : > { %v473_v38 = vsel %vm437_vm1, %v468_v35, %v472_v36  ;;  %v480_v42 = vor.u32 %v479_v40, %v475_v39  ;;  %v494_v57 = vshll.u32 %v2165_v51, 16  ;;  %v675_v62 = vrot.slane %v2343_v49, 1  ;;  %v2422_v39 = vld [vmem:[%s2281_s23 + $0x60] sm:$0xff]   ;;  %v2173_v41 = vld [vmem:[%s2281_s23 + $0x68] ss:$0 sps:$4 sm:$0x11]  }
  0x1f   : > { %v674_v52 = vsel %vm662_vm0, %v672_v47, %v673_v48  ;;  %v491_v56 = vrot.slane %v489_v53, 1  ;;  %v676_v63 = vrot.slane %v2165_v51, 1  ;;  %v501_v4 = vshll.u32 %v2359_v60, 16  ;;  %v2435_v48 = vld [vmem:[%s2281_s23 + $0x6c] sm:$0xff]  }
  0x20   : > { %632 = vrot.lane.b32.xlu0 %v461_v32, %s2222_s27  ;;  %v485_v45 = vsel %vm437_vm1, %v480_v42, %v484_v43  ;;  %v496_v59 = vrot.slane %v494_v57, 1  ;;  %v499_v6 = vshrl.u32 %v2359_v60, 16  ;;  %v506_v8 = vshll.u32 %v2167_v2, 16  ;;  %v2175_v53 = vld [vmem:[%s2281_s23 + $0x74] ss:$0 sps:$4 sm:$0x11]  }
  0x21   : > { %832 = vrot.lane.b32.xlu1 %v671_v34, %s2220_s25  ;;  %v492_v58 = vor.u32 %v491_v56, %v487_v55  ;;  %v677_v5 = vsel %vm662_vm0, %v675_v62, %v676_v63  ;;  %v503_v7 = vrot.slane %v501_v4, 1  ;;  %v678_v12 = vrot.slane %v2359_v60, 1 }
  0x22   : > { %v508_v10 = vrot.slane %v506_v8, 1  ;;  %v679_v13 = vrot.slane %v2167_v2, 1  ;;  %v513_v17 = vshll.u32 %v2384_v14, 16  ;;  %v511_v18 = vshrl.u32 %v2384_v14, 16 }
  0x23   : > { %v497_v61 = vsel %vm437_vm1, %v492_v58, %v496_v59  ;;  %v504_v9 = vor.u32 %v503_v7, %v499_v6  ;;  %v518_v20 = vshll.u32 %v2169_v16, 16  ;;  %v681_v25 = vrot.slane %v2384_v14, 1 }
  0x24   : > { %795 = vrot.lane.b32.xlu0 %v461_v32, %s2223_s28  ;;  %v680_v15 = vsel %vm662_vm0, %v678_v12, %v679_v13  ;;  %v515_v19 = vrot.slane %v513_v17, 1  ;;  %v682_v26 = vrot.slane %v2169_v16, 1  ;;  %v525_v28 = vshll.u32 %v2397_v23, 16  ;;  %v2179_v13 = vld [vmem:[%s2281_s23 + $0x80] ss:$0 sps:$4 sm:$0x11]  }
  0x25   : > { %797 = vrot.lane.b32.xlu1 %v473_v38, %s2223_s28  ;;  %v509_v11 = vsel %vm437_vm1, %v504_v9, %v508_v10  ;;  %v520_v22 = vrot.slane %v518_v20, 1  ;;  %v523_v31 = vshrl.u32 %v2397_v23, 16  ;;  %v530_v33 = vshll.u32 %v2171_v27, 16  ;;  %v2460_v9 = vld [vmem:[%s2281_s23 + $0x78] sm:$0xff]  }
  0x26   : > { %v516_v21 = vor.u32 %v515_v19, %v511_v18  ;;  %v683_v29 = vsel %vm662_vm0, %v681_v25, %v682_v26  ;;  %v527_v32 = vrot.slane %v525_v28, 1  ;;  %v684_v37 = vrot.slane %v2397_v23, 1  ;;  %v2478_v28 = vld [vmem:[%s2281_s23 + $0x84] sm:$0xff]  }
  0x27   : > { %v532_v35 = vrot.slane %v530_v33, 1  ;;  %v537_v42 = vshll.u32 %v2422_v39, 16  ;;  %v535_v43 = vshrl.u32 %v2422_v39, 16  ;;  %v687_v51 = vrot.slane %v2422_v39, 1 }
  0x28   : > { %867 = vrot.lane.b32.xlu0 %v2284_v0, %s2224_s5  ;;  %v521_v24 = vsel %vm437_vm1, %v516_v21, %v520_v22  ;;  %v549_v54 = vshll.u32 %v2435_v48, 16  ;;  %v547_v56 = vshrl.u32 %v2435_v48, 16  ;;  %v554_v58 = vshll.u32 %v2175_v53, 16 }
  0x29   : > { %869 = vrot.lane.b32.xlu1 %v2313_v30, %s2224_s5  ;;  %v539_v44 = vrot.slane %v537_v42, 1  ;;  %v690_v6 = vrot.slane %v2435_v48, 1  ;;  %v691_v7 = vrot.slane %v2175_v53, 1  ;;  %v559_v19 = vshrl.u32 %v2460_v9, 16 }
  0x2a   : > { %v551_v57 = vrot.slane %v549_v54, 1  ;;  %v556_v63 = vrot.slane %v554_v58, 1  ;;  %v566_v21 = vshll.u32 %v2179_v13, 16  ;;  %v693_v33 = vrot.slane %v2460_v9, 1 }
  0x2b   : > { %v540_v46 = vor.u32 %v539_v44, %v535_v43 }
  0x2c   : > { %914 = vrot.lane.b32.xlu0 %v473_v38, %s2225_s8  ;;  %v552_v62 = vor.u32 %v551_v57, %v547_v56 }
  0x2d   : > { %916 = vrot.lane.b32.xlu1 %v485_v45, %s2225_s8 }
  0x2e   : > { %v557_v4 = vsel %vm437_vm1, %v552_v62, %v556_v63 }
  0x30   : > { %949 = vrot.lane.b32.xlu0 %v671_v34, %s2226_s11 }
  0x31   : > { %634 = vrot.lane.b32.xlu1 %v473_v38, %s2222_s27  ;;  %v685_v38 = vrot.slane %v2171_v27, 1 }
  0x33   : > { %v686_v40 = vsel %vm662_vm0, %v684_v37, %v685_v38  ;;  %v2182_v38 = vld [vmem:[%s2281_s23 + $0x8c] ss:$0 sps:$4 sm:$0x11]  }
  0x34   : > { %951 = vrot.lane.b32.xlu0 %v674_v52, %s2226_s11 }
  0x35   : > { %636 = vrot.lane.b32.xlu1 %v485_v45, %s2222_s27 }
  0x38   : > { %715 = vrot.lane.b32.xlu0 %v671_v34, %s2221_s26  ;;  %v528_v34 = vor.u32 %v527_v32, %v523_v31 }
  0x39   : > { %717 = vrot.lane.b32.xlu1 %v674_v52, %s2221_s26 }
  0x3a   : > { %v533_v36 = vsel %vm437_vm1, %v528_v34, %v532_v35  ;;  %v694_v34 = vrot.slane %v2179_v13, 1 }
  0x3c   : > { %752 = vrot.lane.b32.xlu0 %v2313_v30, %s2219_s24 }
  0x3d   : > { %754 = vrot.lane.b32.xlu1 %v2343_v49, %s2219_s24 }
  0x40   : > { %799 = vrot.lane.b32.xlu0 %v485_v45, %s2223_s28  ;;  %v542_v45 = vshll.u32 %v2173_v41, 16 }
  0x41   : > { %801 = vrot.lane.b32.xlu1 %v497_v61, %s2223_s28 }
  0x42   : > { %v544_v47 = vrot.slane %v542_v45, 1  ;;  %v695_v45 = vsel %vm662_vm0, %v693_v33, %v694_v34 }
  0x44   : > { %834 = vrot.lane.b32.xlu0 %v674_v52, %s2220_s25  ;;  %v545_v50 = vsel %vm437_vm1, %v540_v46, %v544_v47  ;;  %v688_v52 = vrot.slane %v2173_v41, 1 }
  0x45   : > { %836 = vrot.lane.b32.xlu1 %v677_v5, %s2220_s25 }
  0x46   : > { %v689_v55 = vsel %vm662_vm0, %v687_v51, %v688_v52  ;;  %v578_v52 = vshll.u32 %v2182_v38, 16 }
  0x48   : > { %871 = vrot.lane.b32.xlu0 %v2343_v49, %s2224_s5 }
  0x49   : > { %873 = vrot.lane.b32.xlu1 %v2359_v60, %s2224_s5 }
  0x4c   : > { %918 = vrot.lane.b32.xlu0 %v497_v61, %s2225_s8 }
  0x4d   : > { %920 = vrot.lane.b32.xlu1 %v509_v11, %s2225_s8 }
  0x50   : > { %953 = vrot.lane.b32.xlu0 %v677_v5, %s2226_s11 }
  0x51   : > { %638 = vrot.lane.b32.xlu1 %v497_v61, %s2222_s27 }
  0x54   : > { %955 = vrot.lane.b32.xlu0 %v680_v15, %s2226_s11 }
  0x55   : > { %640 = vrot.lane.b32.xlu1 %v509_v11, %s2222_s27 }
  0x58   : > { %719 = vrot.lane.b32.xlu0 %v677_v5, %s2221_s26 }
  0x59   : > { %721 = vrot.lane.b32.xlu1 %v680_v15, %s2221_s26 }
  0x5c   : > { %756 = vrot.lane.b32.xlu0 %v2359_v60, %s2219_s24 }
  0x5d   : > { %758 = vrot.lane.b32.xlu1 %v2384_v14, %s2219_s24 }
  0x60   : > { %803 = vrot.lane.b32.xlu0 %v509_v11, %s2223_s28  ;;  %v692_v11 = vsel %vm662_vm0, %v690_v6, %v691_v7  ;;  %v696_v6 = vrot.slane %v2478_v28, 1  ;;  %v697_v7 = vrot.slane %v2182_v38, 1 }
  0x61   : > { %805 = vrot.lane.b32.xlu1 %v521_v24, %s2223_s28 }
  0x64   : > { %838 = vrot.lane.b32.xlu0 %v680_v15, %s2220_s25  ;;  %v561_v15 = vshll.u32 %v2460_v9, 16 }
  0x65   : > { %840 = vrot.lane.b32.xlu1 %v683_v29, %s2220_s25 }
  0x66   : > { %v563_v20 = vrot.slane %v561_v15, 1  ;;  %v2184_v15 = vld [vmem:[%s2281_s23 + $0x98] ss:$0 sps:$4 sm:$0x11]  }
  0x68   : > { %875 = vrot.lane.b32.xlu0 %v2384_v14, %s2224_s5  ;;  %v564_v27 = vor.u32 %v563_v20, %v559_v19 }
  0x69   : > { %877 = vrot.lane.b32.xlu1 %v2397_v23, %s2224_s5 }
  0x6c   : > { %922 = vrot.lane.b32.xlu0 %v521_v24, %s2225_s8 }
  0x6d   : > { %924 = vrot.lane.b32.xlu1 %v533_v36, %s2225_s8 }
  0x70   : > { %957 = vrot.lane.b32.xlu0 %v683_v29, %s2226_s11 }
  0x71   : > { %642 = vrot.lane.b32.xlu1 %v521_v24, %s2222_s27 }
  0x74   : > { %959 = vrot.lane.b32.xlu0 %v686_v40, %s2226_s11 }
  0x75   : > { %644 = vrot.lane.b32.xlu1 %v533_v36, %s2222_s27 }
  0x78   : > { %723 = vrot.lane.b32.xlu0 %v683_v29, %s2221_s26 }
  0x79   : > { %725 = vrot.lane.b32.xlu1 %v686_v40, %s2221_s26 }
  0x7c   : > { %760 = vrot.lane.b32.xlu0 %v2397_v23, %s2219_s24 }
  0x7d   : > { %762 = vrot.lane.b32.xlu1 %v2422_v39, %s2219_s24 }
  0x80   : > { %807 = vrot.lane.b32.xlu0 %v533_v36, %s2223_s28 }
  0x81   : > { %809 = vrot.lane.b32.xlu1 %v545_v50, %s2223_s28 }
  0x84   : > { %842 = vrot.lane.b32.xlu0 %v686_v40, %s2220_s25  ;;  %v573_v40 = vshll.u32 %v2478_v28, 16 }
  0x85   : > { %844 = vrot.lane.b32.xlu1 %v689_v55, %s2220_s25 }
  0x86   : > { %v751_v59 = vpop.permute.xlu1 %750  ;;  %v749_v61 = vpop.permute.xlu0 %748  ;;  %v575_v51 = vrot.slane %v573_v40, 1 }
  0x88   : > { %879 = vrot.lane.b32.xlu0 %v2422_v39, %s2224_s5 }
  0x89   : > { %881 = vrot.lane.b32.xlu1 %v2435_v48, %s2224_s5 }
  0x8a   : > { %v831_v2 = vpop.permute.xlu0 %830 }
  0x8b   : > { %v712_v5 = vpop.permute.xlu1 %711 }
  0x8c   : > { %926 = vrot.lane.b32.xlu0 %v545_v50, %s2225_s8 }
  0x8d   : > { %928 = vrot.lane.b32.xlu1 %v557_v4, %s2225_s8 }
  0x8e   : > { %v631_v8 = vpop.permute.xlu0 %630 }
  0x8f   : > { %v714_v10 = vpop.permute.xlu1 %713  ;;  %v983_v17 = vsel %vm981_vm3, %v2293_v3, %v631_v8  ;;  %v568_v3 = vrot.slane %v566_v21, 1  ;;  %v590_v21 = vshll.u32 %v2184_v15, 16 }
  0x90   : > { %961 = vrot.lane.b32.xlu0 %v689_v55, %s2226_s11  ;;  %v1016_v25 = vsel %vm1014_vm4, %v983_v17, %v712_v5 }
  0x91   : > { %646 = vrot.lane.b32.xlu1 %v545_v50, %s2222_s27  ;;  %v1049_v32 = vsel %vm1047_vm5, %v1016_v25, %v749_v61  ;;  %v569_v37 = vsel %vm437_vm1, %v564_v27, %v568_v3  ;;  %v571_v50 = vshrl.u32 %v2478_v28, 16  ;;  %v580_v61 = vrot.slane %v578_v52, 1  ;;  %v2531_v27 = vld [vmem:[%s2281_s23 + $0x9c] sm:$0xff]  }
  0x92   : > { %v633_v12 = vpop.permute.xlu0 %632 }
  0x93   : > { %v833_v16 = vpop.permute.xlu1 %832  ;;  %v985_v24 = vsel %vm981_vm3, %v2287_v1, %v633_v12  ;;  %v698_v12 = vsel %vm662_vm0, %v696_v6, %v697_v7  ;;  %v702_v6 = vrot.slane %v2531_v27, 1 }
  0x94   : > { %963 = vrot.lane.b32.xlu0 %v692_v11, %s2226_s11  ;;  %v1018_v29 = vsel %vm1014_vm4, %v985_v24, %v714_v10  ;;  %v2518_v10 = vld [vmem:[%s2281_s23 + $0x90] sm:$0xff]  }
  0x95   : > { %648 = vrot.lane.b32.xlu1 %v557_v4, %s2222_s27  ;;  %v1051_v35 = vsel %vm1047_vm5, %v1018_v29, %v751_v59  ;;  %v576_v59 = vor.u32 %v575_v51, %v571_v50  ;;  %v583_v19 = vshrl.u32 %v2518_v10, 16 }
  0x96   : > { %v796_v18 = vpop.permute.xlu0 %795 }
  0x97   : > { %v798_v22 = vpop.permute.xlu1 %797  ;;  %v1082_v1 = vsel %vm1080_vm6, %v1049_v32, %v796_v18  ;;  %v699_v32 = vrot.slane %v2518_v10, 1 }
  0x98   : > { %727 = vrot.lane.b32.xlu0 %v689_v55, %s2221_s26  ;;  %v1115_v42 = vsel %vm1113_vm7, %v1082_v1, %v831_v2  ;;  %v1084_v43 = vsel %vm1080_vm6, %v1051_v35, %v798_v22  ;;  %v700_v1 = vrot.slane %v2184_v15, 1 }
  0x99   : > { %729 = vrot.lane.b32.xlu1 %v692_v11, %s2221_s26  ;;  %v1117_v55 = vsel %vm1113_vm7, %v1084_v43, %v833_v16  ;;  %v585_v16 = vshll.u32 %v2518_v10, 16 }
  0x9a   : > { %v868_v26 = vpop.permute.xlu0 %867 }
  0x9b   : > { %v870_v31 = vpop.permute.xlu1 %869  ;;  %v1148_v44 = vsel %vm1146_vm8, %v1115_v42, %v868_v26  ;;  %v587_v20 = vrot.slane %v585_v16, 1  ;;  %v592_v26 = vrot.slane %v590_v21, 1  ;;  %v2188_v16 = vld [vmem:[%s2281_s23 + $0xb0] ss:$0 sps:$4 sm:$0x11]  }
  0x9c   : > { %764 = vrot.lane.b32.xlu0 %v2435_v48, %s2219_s24  ;;  %v1150_v56 = vsel %vm1146_vm8, %v1117_v55, %v870_v31 }
  0x9d   : > { %766 = vrot.lane.b32.xlu1 %v2460_v9, %s2219_s24  ;;  %v588_v25 = vor.u32 %v587_v20, %v583_v19 }
  0x9e   : > { %v915_v36 = vpop.permute.xlu0 %914 }
  0x9f   : > { %v917_v41 = vpop.permute.xlu1 %916  ;;  %v1181_v46 = vsel %vm1179_vm9, %v1148_v44, %v915_v36  ;;  %v593_v35 = vsel %vm437_vm1, %v588_v25, %v592_v26  ;;  %v2186_v36 = vld [vmem:[%s2281_s23 + $0xa4] ss:$0 sps:$4 sm:$0x11]   ;;  %v701_v44 = vsel %vm662_vm0, %v699_v32, %v700_v1 }
  0xa0   : > { %811 = vrot.lane.b32.xlu0 %v557_v4, %s2223_s28  ;;  %v1183_v57 = vsel %vm1179_vm9, %v1150_v56, %v917_v41  ;;  %v581_v4 = vsel %vm437_vm1, %v576_v59, %v580_v61  ;;  %v602_v51 = vshll.u32 %v2186_v36, 16  ;;  %v703_v7 = vrot.slane %v2186_v36, 1 }
  0xa1   : > { %813 = vrot.lane.b32.xlu1 %v569_v37, %s2223_s28 }
  0xa2   : > { %v950_v47 = vpop.permute.xlu0 %949  ;;  %v604_v61 = vrot.slane %v602_v51, 1 }
  0xa3   : > { %v635_v53 = vpop.permute.xlu1 %634  ;;  %v1214_v54 = vsel %vm1212_vm10, %v1181_v46, %v950_v47 }
  0xa4   : > { %846 = vrot.lane.b32.xlu0 %v692_v11, %s2220_s25  ;;  %2082 = vmatprep.mubr.msk.bf16.mxu0 %vm1265_vm11, %v1214_v54  ;;  %v987_v29 = vsel %vm981_vm3, %v2284_v0, %v635_v53 }
  0xa5   : > { %848 = vrot.lane.b32.xlu1 %v695_v45, %s2220_s25 }
  0xa6   : > { %v952_v58 = vpop.permute.xlu0 %951 }
  0xa7   : > { %v637_v62 = vpop.permute.xlu1 %636  ;;  %v1216_v63 = vsel %vm1212_vm10, %v1183_v57, %v952_v58 }
  0xa8   : > { %883 = vrot.lane.b32.xlu0 %v2460_v9, %s2224_s5  ;;  %2083 = vmatmul.mubr.msk.bf16.vlgmr.msra.gmra.mrb[0].mxu0 %vm1265_vm11, %v1216_v63  ;;  %v989_v40 = vsel %vm981_vm3, %v2313_v30, %v637_v62 }
  0xa9   : > { %885 = vrot.lane.b32.xlu1 %v2478_v28, %s2224_s5 }
  0xaa   : > { %v716_v2 = vpop.permute.xlu0 %715 }
  0xab   : > { %v718_v5 = vpop.permute.xlu1 %717  ;;  %v1020_v31 = vsel %vm1014_vm4, %v987_v29, %v716_v2  ;;  %v2589_v29 = vld [vmem:[%s2281_s23 + $0xb4] sm:$0xff]  }
  0xac   : > { %930 = vrot.lane.b32.xlu0 %v569_v37, %s2225_s8  ;;  %v1022_v42 = vsel %vm1014_vm4, %v989_v40, %v718_v5 }
  0xad   : > { %932 = vrot.lane.b32.xlu1 %v581_v4, %s2225_s8 }
  0xae   : > { %v753_v8 = vpop.permute.xlu0 %752 }
  0xaf   : > { %v755_v11 = vpop.permute.xlu1 %754  ;;  %v1053_v33 = vsel %vm1047_vm5, %v1020_v31, %v753_v8 }
  0xb0   : > { %965 = vrot.lane.b32.xlu0 %v695_v45, %s2226_s11  ;;  %v1055_v46 = vsel %vm1047_vm5, %v1022_v42, %v755_v11  ;;  %v2576_v11 = vld [vmem:[%s2281_s23 + $0xa8] sm:$0xff]  }
  0xb1   : > { %650 = vrot.lane.b32.xlu1 %v569_v37, %s2222_s27  ;;  %v597_v37 = vshll.u32 %v2531_v27, 16  ;;  %v607_v20 = vshrl.u32 %v2576_v11, 16 }
  0xb2   : > { %v800_v13 = vpop.permute.xlu0 %799 }
  0xb3   : > { %v802_v17 = vpop.permute.xlu1 %801  ;;  %v1086_v0 = vsel %vm1080_vm6, %v1053_v33, %v800_v13  ;;  %v599_v30 = vrot.slane %v597_v37, 1  ;;  %v704_v13 = vsel %vm662_vm0, %v702_v6, %v703_v7  ;;  %v705_v33 = vrot.slane %v2576_v11, 1 }
  0xb4   : > { %967 = vrot.lane.b32.xlu0 %v698_v12, %s2226_s11  ;;  %v1088_v52 = vsel %vm1080_vm6, %v1055_v46, %v802_v17  ;;  %v609_v17 = vshll.u32 %v2576_v11, 16  ;;  %v619_v46 = vshrl.u32 %v2589_v29, 16  ;;  %v708_v6 = vrot.slane %v2589_v29, 1 }
  0xb5   : > { %652 = vrot.lane.b32.xlu1 %v581_v4, %s2222_s27 }
  0xb6   : > { %v835_v18 = vpop.permute.xlu0 %834  ;;  %v611_v21 = vrot.slane %v609_v17, 1  ;;  %v2192_v17 = vld [vmem:[%s2281_s23 + $0xc8] ss:$0 sps:$4 sm:$0x11]  }
  0xb7   : > { %v837_v22 = vpop.permute.xlu1 %836  ;;  %v1119_v41 = vsel %vm1113_vm7, %v1086_v0, %v835_v18  ;;  %v2190_v0 = vld [vmem:[%s2281_s23 + $0xbc] ss:$0 sps:$4 sm:$0x11]  }
  0xb8   : > { %731 = vrot.lane.b32.xlu0 %v695_v45, %s2221_s26  ;;  %v595_v45 = vshrl.u32 %v2531_v27, 16  ;;  %v1121_v55 = vsel %vm1113_vm7, %v1088_v52, %v837_v22  ;;  %v614_v22 = vshll.u32 %v2188_v16, 16  ;;  %v612_v26 = vor.u32 %v611_v21, %v607_v20 }
  0xb9   : > { %733 = vrot.lane.b32.xlu1 %v698_v12, %s2221_s26  ;;  %v626_v51 = vshll.u32 %v2190_v0, 16  ;;  %v709_v7 = vrot.slane %v2190_v0, 1 }
  0xba   : > { %v872_v24 = vpop.permute.xlu0 %871  ;;  %v600_v59 = vor.u32 %v599_v30, %v595_v45 }
  0xbb   : > { %v874_v3 = vpop.permute.xlu1 %873  ;;  %v1152_v43 = vsel %vm1146_vm8, %v1119_v41, %v872_v24 }
  0xbc   : > { %768 = vrot.lane.b32.xlu0 %v2478_v28, %s2219_s24  ;;  %v1154_v56 = vsel %vm1146_vm8, %v1121_v55, %v874_v3  ;;  %v616_v3 = vrot.slane %v614_v22, 1 }
  0xbd   : > { %770 = vrot.lane.b32.xlu1 %v2518_v10, %s2219_s24 }
  0xbe   : > { %v919_v34 = vpop.permute.xlu0 %918  ;;  %v617_v37 = vsel %vm437_vm1, %v612_v26, %v616_v3 }
  0xbf   : > { %v921_v38 = vpop.permute.xlu1 %920  ;;  %v1185_v47 = vsel %vm1179_vm9, %v1152_v43, %v919_v34  ;;  %v706_v34 = vrot.slane %v2188_v16, 1 }
  0xc0   : > { %815 = vrot.lane.b32.xlu0 %v581_v4, %s2223_s28  ;;  %v1187_v57 = vsel %vm1179_vm9, %v1154_v56, %v921_v38  ;;  %v605_v4 = vsel %vm437_vm1, %v600_v59, %v604_v61  ;;  %v621_v38 = vshll.u32 %v2589_v29, 16  ;;  %v628_v61 = vrot.slane %v626_v51, 1 }
  0xc1   : > { %817 = vrot.lane.b32.xlu1 %v593_v35, %s2223_s28  ;;  %v707_v45 = vsel %vm662_vm0, %v705_v33, %v706_v34 }
  0xc2   : > { %v954_v50 = vpop.permute.xlu0 %953 }
  0xc3   : > { %v639_v53 = vpop.permute.xlu1 %638  ;;  %v1218_v54 = vsel %vm1212_vm10, %v1185_v47, %v954_v50 }
  0xc4   : > { %850 = vrot.lane.b32.xlu0 %v698_v12, %s2220_s25  ;;  %2086 = vmatprep.mubr.msk.bf16.mxu0 %vm1265_vm11, %v1218_v54  ;;  %v991_v32 = vsel %vm981_vm3, %v2343_v49, %v639_v53 }
  0xc5   : > { %852 = vrot.lane.b32.xlu1 %v701_v44, %s2220_s25 }
  0xc6   : > { %v956_v58 = vpop.permute.xlu0 %955 }
  0xc7   : > { %v641_v62 = vpop.permute.xlu1 %640  ;;  %v1220_v63 = vsel %vm1212_vm10, %v1187_v57, %v956_v58 }
  0xc8   : > { %887 = vrot.lane.b32.xlu0 %v2518_v10, %s2224_s5  ;;  %2087 = vmatmul.mubr.msk.bf16.gmra.mrb[4].mxu0 %vm1265_vm11, %v1220_v63  ;;  %v993_v41 = vsel %vm981_vm3, %v2359_v60, %v641_v62  ;;  %v623_v60 = vrot.slane %v621_v38, 1 }
  0xc9   : > { %889 = vrot.lane.b32.xlu1 %v2531_v27, %s2224_s5 }
  0xca   : > { %v720_v2 = vpop.permute.xlu0 %719  ;;  %v624_v59 = vor.u32 %v623_v60, %v619_v46 }
  0xcb   : > { %v722_v5 = vpop.permute.xlu1 %721  ;;  %v1024_v1 = vsel %vm1014_vm4, %v991_v32, %v720_v2  ;;  %v2193_v32 = vld [vmem:[%s2281_s23 + $0xcc] sm:$0xff]  }
  0xcc   : > { %934 = vrot.lane.b32.xlu0 %v593_v35, %s2225_s8  ;;  %v1026_v43 = vsel %vm1014_vm4, %v993_v41, %v722_v5 }
  0xcd   : > { %936 = vrot.lane.b32.xlu1 %v605_v4, %s2225_s8 }
  0xce   : > { %v757_v8 = vpop.permute.xlu0 %756 }
  0xcf   : > { %v759_v12 = vpop.permute.xlu1 %758 }
  0xd0   : > { %969 = vrot.lane.b32.xlu0 %v701_v44, %s2226_s11  ;;  %v1059_v47 = vsel %vm1047_vm5, %v1026_v43, %v759_v12  ;;  %v2634_v12 = vld [vmem:[%s2281_s23 + $0xc0] sm:$0xff]  }
  0xd1   : > { %654 = vrot.lane.b32.xlu1 %v593_v35, %s2222_s27  ;;  %v1057_v35 = vsel %vm1047_vm5, %v1024_v1, %v757_v8  ;;  %v784_v21 = vshrl.u32 %v2634_v12, 16 }
  0xd2   : > { %v804_v15 = vpop.permute.xlu0 %803 }
  0xd3   : > { %v806_v18 = vpop.permute.xlu1 %805  ;;  %v1090_v49 = vsel %vm1080_vm6, %v1057_v35, %v804_v15  ;;  %v710_v15 = vsel %vm662_vm0, %v708_v6, %v709_v7  ;;  %v827_v35 = vrot.slane %v2634_v12, 1 }
  0xd4   : > { %971 = vrot.lane.b32.xlu0 %v704_v13, %s2226_s11  ;;  %v1092_v52 = vsel %vm1080_vm6, %v1059_v47, %v806_v18  ;;  %v786_v18 = vshll.u32 %v2634_v12, 16  ;;  %v903_v47 = vshrl.u32 %v2193_v32, 16 }
  0xd5   : > { %656 = vrot.lane.b32.xlu1 %v605_v4, %s2222_s27 }
  0xd6   : > { %v839_v19 = vpop.permute.xlu0 %838  ;;  %v788_v22 = vrot.slane %v786_v18, 1 }
  0xd7   : > { %v841_v24 = vpop.permute.xlu1 %840  ;;  %v1123_v42 = vsel %vm1113_vm7, %v1090_v49, %v839_v19  ;;  %v2194_v49 = vld [vmem:[%s2281_s23 + $0xd4] ss:$0 sps:$4 sm:$0x11]   ;;  %s2833_s23 = scalar_lea.vmem %s2936_s3, %s2275_s19 }
  0xd8   : > { %735 = vrot.lane.b32.xlu0 %v701_v44, %s2221_s26  ;;  %v1125_v55 = vsel %vm1113_vm7, %v1092_v52, %v841_v24  ;;  %v791_v24 = vshll.u32 %v2192_v17, 16  ;;  %v789_v3 = vor.u32 %v788_v22, %v784_v21  ;;  %v947_v6 = vrot.slane %v2194_v49, 1 }
  0xd9   : > { %737 = vrot.lane.b32.xlu1 %v704_v13, %s2221_s26 }
  0xda   : > { %v876_v25 = vpop.permute.xlu0 %875 }
  0xdb   : > { %v878_v31 = vpop.permute.xlu1 %877  ;;  %v1156_v44 = vsel %vm1146_vm8, %v1123_v42, %v876_v25 }
  0xdc   : > { %772 = vrot.lane.b32.xlu0 %v2531_v27, %s2219_s24  ;;  %v1158_v56 = vsel %vm1146_vm8, %v1125_v55, %v878_v31  ;;  %v793_v31 = vrot.slane %v791_v24, 1 }
  0xdd   : > { %774 = vrot.lane.b32.xlu1 %v2576_v11, %s2219_s24 }
  0xde   : > { %v923_v36 = vpop.permute.xlu0 %922  ;;  %v794_v38 = vsel %vm437_vm1, %v789_v3, %v793_v31 }
  0xdf   : > { %v925_v40 = vpop.permute.xlu1 %924  ;;  %v1189_v50 = vsel %vm1179_vm9, %v1156_v44, %v923_v36  ;;  %v828_v36 = vrot.slane %v2192_v17, 1 }
  0xe0   : > { %819 = vrot.lane.b32.xlu0 %v605_v4, %s2223_s28  ;;  %v1191_v57 = vsel %vm1179_vm9, %v1158_v56, %v925_v40  ;;  %v629_v4 = vsel %vm437_vm1, %v624_v59, %v628_v61  ;;  %v905_v40 = vshll.u32 %v2193_v32, 16 }
  0xe1   : > { %821 = vrot.lane.b32.xlu1 %v617_v37, %s2223_s28  ;;  %v829_v46 = vsel %vm662_vm0, %v827_v35, %v828_v36 }
  0xe2   : > { %v958_v30 = vpop.permute.xlu0 %957  ;;  %v907_v51 = vrot.slane %v905_v40, 1 }
  0xe3   : > { %v643_v53 = vpop.permute.xlu1 %642  ;;  %v1222_v54 = vsel %vm1212_vm10, %v1189_v50, %v958_v30 }
  0xe4   : > { %854 = vrot.lane.b32.xlu0 %v704_v13, %s2220_s25  ;;  %2090 = vmatprep.mubr.msk.bf16.mxu0 %vm1265_vm11, %v1222_v54  ;;  %v995_v33 = vsel %vm981_vm3, %v2384_v14, %v643_v53  ;;  %v908_v59 = vor.u32 %v907_v51, %v903_v47 }
  0xe5   : > { %856 = vrot.lane.b32.xlu1 %v707_v45, %s2220_s25 }
  0xe6   : > { %v960_v58 = vpop.permute.xlu0 %959 }
  0xe7   : > { %v645_v62 = vpop.permute.xlu1 %644  ;;  %v1224_v63 = vsel %vm1212_vm10, %v1191_v57, %v960_v58 }
  0xe8   : > { %891 = vrot.lane.b32.xlu0 %v2576_v11, %s2224_s5  ;;  %2091 = vmatmul.mubr.msk.bf16.gmra.mrb[8].mxu0 %vm1265_vm11, %v1224_v63  ;;  %v997_v42 = vsel %vm981_vm3, %v2397_v23, %v645_v62  ;;  %v910_v23 = vshll.u32 %v2194_v49, 16 }
  0xe9   : > { %893 = vrot.lane.b32.xlu1 %v2589_v29, %s2224_s5 }
  0xea   : > { %v724_v2 = vpop.permute.xlu0 %723  ;;  %v912_v61 = vrot.slane %v910_v23, 1 }
  0xeb   : > { %v726_v5 = vpop.permute.xlu1 %725  ;;  %v1028_v34 = vsel %vm1014_vm4, %v995_v33, %v724_v2 }
  0xec   : > { %938 = vrot.lane.b32.xlu0 %v617_v37, %s2225_s8  ;;  %v1030_v44 = vsel %vm1014_vm4, %v997_v42, %v726_v5  ;;  %v946_v5 = vrot.slane %v2193_v32, 1 }
  0xed   : > { %940 = vrot.lane.b32.xlu1 %v629_v4, %s2225_s8 }
  0xee   : > { %v761_v8 = vpop.permute.xlu0 %760 }
  0xef   : > { %v763_v13 = vpop.permute.xlu1 %762 }
  0xf0   : > { %973 = vrot.lane.b32.xlu0 %v707_v45, %s2226_s11  ;;  %v1063_v50 = vsel %vm1047_vm5, %v1030_v44, %v763_v13  ;;  %v948_v13 = vsel %vm662_vm0, %v946_v5, %v947_v6 }
  0xf1   : > { %658 = vrot.lane.b32.xlu1 %v617_v37, %s2222_s27  ;;  %v1061_v37 = vsel %vm1047_vm5, %v1028_v34, %v761_v8 }
  0xf2   : > { %v808_v16 = vpop.permute.xlu0 %807 }
  0xf3   : > { %v810_v19 = vpop.permute.xlu1 %809  ;;  %v1094_v14 = vsel %vm1080_vm6, %v1061_v37, %v808_v16 }
  0xf4   : > { %975 = vrot.lane.b32.xlu0 %v710_v15, %s2226_s11  ;;  %v1096_v52 = vsel %vm1080_vm6, %v1063_v50, %v810_v19 }
  0xf5   : > { %660 = vrot.lane.b32.xlu1 %v629_v4, %s2222_s27 }
  0xf6   : > { %v843_v20 = vpop.permute.xlu0 %842 }
  0xf7   : > { %v845_v25 = vpop.permute.xlu1 %844  ;;  %v1127_v43 = vsel %vm1113_vm7, %v1094_v14, %v843_v20 }
  0xf8   : > { %739 = vrot.lane.b32.xlu0 %v707_v45, %s2221_s26  ;;  %v1129_v55 = vsel %vm1113_vm7, %v1096_v52, %v845_v25 }
  0xf9   : > { %741 = vrot.lane.b32.xlu1 %v710_v15, %s2221_s26  ;;  %s2839_s26 = scalar_lea.vmem %s2937_s4, %s2275_s19 }
  0xfa   : > { %v880_v26 = vpop.permute.xlu0 %879 }
  0xfb   : > { %v882_v1 = vpop.permute.xlu1 %881  ;;  %v1160_v45 = vsel %vm1146_vm8, %v1127_v43, %v880_v26 }
  0xfc   : > { %776 = vrot.lane.b32.xlu0 %v2589_v29, %s2219_s24  ;;  %v1162_v56 = vsel %vm1146_vm8, %v1129_v55, %v882_v1 }
  0xfd   : > { %778 = vrot.lane.b32.xlu1 %v2634_v12, %s2219_s24 }
  0xfe   : > { %v927_v0 = vpop.permute.xlu0 %926 }
  0xff   : > { %v929_v41 = vpop.permute.xlu1 %928  ;;  %v1193_v30 = vsel %vm1179_vm9, %v1160_v45, %v927_v0 }
 0x100   : > { %823 = vrot.lane.b32.xlu0 %v629_v4, %s2223_s28  ;;  %v1195_v57 = vsel %vm1179_vm9, %v1162_v56, %v929_v41  ;;  %v913_v4 = vsel %vm437_vm1, %v908_v59, %v912_v61 }
 0x101   : > { %825 = vrot.lane.b32.xlu1 %v794_v38, %s2223_s28 }
 0x102   : > { %v962_v60 = vpop.permute.xlu0 %961 }
 0x103   : > { %v647_v53 = vpop.permute.xlu1 %646  ;;  %v1226_v54 = vsel %vm1212_vm10, %v1193_v30, %v962_v60 }
 0x104   : > { %858 = vrot.lane.b32.xlu0 %v710_v15, %s2220_s25  ;;  %2094 = vmatprep.mubr.msk.bf16.mxu0 %vm1265_vm11, %v1226_v54  ;;  %v999_v21 = vsel %vm981_vm3, %v2422_v39, %v647_v53 }
 0x105   : > { %860 = vrot.lane.b32.xlu1 %v829_v46, %s2220_s25 }
 0x106   : > { %v964_v58 = vpop.permute.xlu0 %963 }
 0x107   : > { %v649_v62 = vpop.permute.xlu1 %648  ;;  %v1228_v63 = vsel %vm1212_vm10, %v1195_v57, %v964_v58 }
 0x108   : > { %895 = vrot.lane.b32.xlu0 %v2634_v12, %s2224_s5  ;;  %2095 = vmatmul.mubr.msk.bf16.gmra.mrb[12].mxu0 %vm1265_vm11, %v1228_v63  ;;  %v1001_v31 = vsel %vm981_vm3, %v2435_v48, %v649_v62 }
 0x109   : > { %897 = vrot.lane.b32.xlu1 %v2193_v32, %s2224_s5 }
 0x10a   : > { %v728_v2 = vpop.permute.xlu0 %727 }
 0x10b   : > { %v730_v7 = vpop.permute.xlu1 %729  ;;  %v1032_v22 = vsel %vm1014_vm4, %v999_v21, %v728_v2 }
 0x10c   : > { %942 = vrot.lane.b32.xlu0 %v794_v38, %s2225_s8  ;;  %v1034_v1 = vsel %vm1014_vm4, %v1001_v31, %v730_v7 }
 0x10d   : > { %944 = vrot.lane.b32.xlu1 %v913_v4, %s2225_s8 }
 0x10e   : > { %v765_v8 = vpop.permute.xlu0 %764 }
 0x10f   : > { %v767_v15 = vpop.permute.xlu1 %766  ;;  %v1065_v24 = vsel %vm1047_vm5, %v1032_v22, %v765_v8 }
 0x110   : > { %977 = vrot.lane.b32.xlu0 %v829_v46, %s2226_s11  ;;  %v1067_v34 = vsel %vm1047_vm5, %v1034_v1, %v767_v15 }
 0x111   : > { %979 = vrot.lane.b32.xlu1 %v948_v13, %s2226_s11 }
 0x112   : > { %v812_v12 = vpop.permute.xlu0 %811 }
 0x113   : > { %v814_v16 = vpop.permute.xlu1 %813  ;;  %v1098_v26 = vsel %vm1080_vm6, %v1065_v24, %v812_v12 }
 0x114   : > { %v1100_v36 = vsel %vm1080_vm6, %v1067_v34, %v814_v16 }
 0x116   : > { %v847_v17 = vpop.permute.xlu0 %846 }
 0x117   : > { %v849_v18 = vpop.permute.xlu1 %848  ;;  %v1131_v32 = vsel %vm1113_vm7, %v1098_v26, %v847_v17 }
 0x118   : > { %v1133_v38 = vsel %vm1113_vm7, %v1100_v36, %v849_v18 }
 0x11a   : > { %v884_v19 = vpop.permute.xlu0 %883 }
 0x11b   : > { %v886_v20 = vpop.permute.xlu1 %885  ;;  %v1164_v33 = vsel %vm1146_vm8, %v1131_v32, %v884_v19 }
 0x11c   : > { %v1166_v48 = vsel %vm1146_vm8, %v1133_v38, %v886_v20 }
 0x11e   : > { %v931_v25 = vpop.permute.xlu0 %930 }
 0x11f   : > { %v933_v3 = vpop.permute.xlu1 %932  ;;  %v1197_v39 = vsel %vm1179_vm9, %v1164_v33, %v931_v25 }
 0x120   : > { %v1199_v49 = vsel %vm1179_vm9, %v1166_v48, %v933_v3 }
 0x122   : > { %v966_v35 = vpop.permute.xlu0 %965 }
 0x123   : > { %v651_v37 = vpop.permute.xlu1 %650  ;;  %v1230_v0 = vsel %vm1212_vm10, %v1197_v39, %v966_v35 }
 0x124   : > { %2098 = vmatprep.mubr.msk.bf16.mxu1 %vm1265_vm11, %v1230_v0  ;;  %v1003_v23 = vsel %vm981_vm3, %v2460_v9, %v651_v37 }
 0x126   : > { %v968_v40 = vpop.permute.xlu0 %967 }
 0x127   : > { %v653_v14 = vpop.permute.xlu1 %652  ;;  %v1232_v41 = vsel %vm1212_vm10, %v1199_v49, %v968_v40 }
 0x128   : > { %2099 = vmatmul.mubr.msk.bf16.vlgmr.msra.gmra.mrb[0].mxu1 %vm1265_vm11, %v1232_v41  ;;  %v1005_v57 = vsel %vm981_vm3, %v2478_v28, %v653_v14 }
 0x12a   : > { %v732_v42 = vpop.permute.xlu0 %731 }
 0x12b   : > { %v734_v43 = vpop.permute.xlu1 %733  ;;  %v1036_v52 = vsel %vm1014_vm4, %v1003_v23, %v732_v42 }
 0x12c   : > { %v1038_v59 = vsel %vm1014_vm4, %v1005_v57, %v734_v43 }
 0x12e   : > { %v769_v44 = vpop.permute.xlu0 %768 }
 0x12f   : > { %v771_v45 = vpop.permute.xlu1 %770  ;;  %v1069_v53 = vsel %vm1047_vm5, %v1036_v52, %v769_v44 }
 0x130   : > { %v1071_v62 = vsel %vm1047_vm5, %v1038_v59, %v771_v45 }
 0x132   : > { %v816_v46 = vpop.permute.xlu0 %815 }
 0x133   : > { %v818_v47 = vpop.permute.xlu1 %817  ;;  %v1102_v55 = vsel %vm1080_vm6, %v1069_v53, %v816_v46 }
 0x134   : > { %v1104_v2 = vsel %vm1080_vm6, %v1071_v62, %v818_v47 }
 0x136   : > { %v851_v50 = vpop.permute.xlu0 %850 }
 0x137   : > { %v853_v30 = vpop.permute.xlu1 %852  ;;  %v1135_v58 = vsel %vm1113_vm7, %v1102_v55, %v851_v50 }
 0x138   : > { %v1137_v6 = vsel %vm1113_vm7, %v1104_v2, %v853_v30 }
 0x13a   : > { %v888_v60 = vpop.permute.xlu0 %887 }
 0x13b   : > { %v890_v51 = vpop.permute.xlu1 %889  ;;  %v1168_v61 = vsel %vm1146_vm8, %v1135_v58, %v888_v60 }
 0x13c   : > { %v1170_v28 = vsel %vm1146_vm8, %v1137_v6, %v890_v51 }
 0x13e   : > { %v935_v54 = vpop.permute.xlu0 %934 }
 0x13f   : > { %v937_v56 = vpop.permute.xlu1 %936  ;;  %v1201_v9 = vsel %vm1179_vm9, %v1168_v61, %v935_v54 }
 0x140   : > { %v1203_v7 = vsel %vm1179_vm9, %v1170_v28, %v937_v56 }
 0x142   : > { %v970_v63 = vpop.permute.xlu0 %969 }
 0x143   : > { %v655_v4 = vpop.permute.xlu1 %654  ;;  %v1234_v5 = vsel %vm1212_vm10, %v1201_v9, %v970_v63 }
 0x144   : > { %2102 = vmatprep.mubr.msk.bf16.mxu1 %vm1265_vm11, %v1234_v5  ;;  %v1007_v26 = vsel %vm981_vm3, %v2518_v10, %v655_v4 }
 0x146   : > { %v972_v8 = vpop.permute.xlu0 %971 }
 0x147   : > { %v657_v13 = vpop.permute.xlu1 %656  ;;  %v1236_v15 = vsel %vm1212_vm10, %v1203_v7, %v972_v8 }
 0x148   : > { %2103 = vmatmul.mubr.msk.bf16.gmra.mrb[4].mxu1 %vm1265_vm11, %v1236_v15  ;;  %v1009_v34 = vsel %vm981_vm3, %v2531_v27, %v657_v13 }
 0x14a   : > { %v736_v12 = vpop.permute.xlu0 %735 }
 0x14b   : > { %v738_v16 = vpop.permute.xlu1 %737  ;;  %v1040_v3 = vsel %vm1014_vm4, %v1007_v26, %v736_v12 }
 0x14c   : > { %v1042_v35 = vsel %vm1014_vm4, %v1009_v34, %v738_v16 }
 0x14e   : > { %v773_v17 = vpop.permute.xlu0 %772 }
 0x14f   : > { %v775_v18 = vpop.permute.xlu1 %774  ;;  %v1073_v31 = vsel %vm1047_vm5, %v1040_v3, %v773_v17 }
 0x150   : > { %v1075_v37 = vsel %vm1047_vm5, %v1042_v35, %v775_v18 }
 0x152   : > { %v820_v19 = vpop.permute.xlu0 %819 }
 0x153   : > { %v822_v20 = vpop.permute.xlu1 %821  ;;  %v1106_v1 = vsel %vm1080_vm6, %v1073_v31, %v820_v19 }
 0x154   : > { %v1108_v38 = vsel %vm1080_vm6, %v1075_v37, %v822_v20 }
 0x156   : > { %v855_v21 = vpop.permute.xlu0 %854 }
 0x157   : > { %v857_v22 = vpop.permute.xlu1 %856  ;;  %v1139_v39 = vsel %vm1113_vm7, %v1106_v1, %v855_v21 }
 0x158   : > { %v1141_v40 = vsel %vm1113_vm7, %v1108_v38, %v857_v22 }
 0x15a   : > { %v892_v24 = vpop.permute.xlu0 %891 }
 0x15b   : > { %v894_v25 = vpop.permute.xlu1 %893  ;;  %v1172_v36 = vsel %vm1146_vm8, %v1139_v39, %v892_v24 }
 0x15c   : > { %v1174_v27 = vsel %vm1146_vm8, %v1141_v40, %v894_v25 }
 0x15e   : > { %v939_v32 = vpop.permute.xlu0 %938 }
 0x15f   : > { %v941_v33 = vpop.permute.xlu1 %940  ;;  %v1205_v10 = vsel %vm1179_vm9, %v1172_v36, %v939_v32 }
 0x160   : > { %v1207_v14 = vsel %vm1179_vm9, %v1174_v27, %v941_v33 }
 0x162   : > { %v974_v0 = vpop.permute.xlu0 %973 }
 0x163   : > { %v659_v48 = vpop.permute.xlu1 %658  ;;  %v1238_v49 = vsel %vm1212_vm10, %v1205_v10, %v974_v0 }
 0x164   : > { %2106 = vmatprep.mubr.msk.bf16.mxu1 %vm1265_vm11, %v1238_v49  ;;  %v1011_v23 = vsel %vm981_vm3, %v2576_v11, %v659_v48 }
 0x166   : > { %v976_v41 = vpop.permute.xlu0 %975 }
 0x167   : > { %v661_v42 = vpop.permute.xlu1 %660  ;;  %v1240_v43 = vsel %vm1212_vm10, %v1207_v14, %v976_v41 }
 0x168   : > { %2107 = vmatmul.mubr.msk.bf16.gmra.mrb[8].mxu1 %vm1265_vm11, %v1240_v43  ;;  %v1013_v53 = vsel %vm981_vm3, %v2589_v29, %v661_v42 }
 0x16a   : > { %v740_v44 = vpop.permute.xlu0 %739 }
 0x16b   : > { %v742_v45 = vpop.permute.xlu1 %741  ;;  %v1044_v54 = vsel %vm1014_vm4, %v1011_v23, %v740_v44 }
 0x16c   : > { %v1046_v57 = vsel %vm1014_vm4, %v1013_v53, %v742_v45 }
 0x16e   : > { %v777_v46 = vpop.permute.xlu0 %776 }
 0x16f   : > { %v779_v47 = vpop.permute.xlu1 %778  ;;  %v1077_v11 = vsel %vm1047_vm5, %v1044_v54, %v777_v46 }
 0x170   : > { %v1079_v29 = vsel %vm1047_vm5, %v1046_v57, %v779_v47 }
 0x172   : > { %v824_v50 = vpop.permute.xlu0 %823 }
 0x173   : > { %v826_v30 = vpop.permute.xlu1 %825  ;;  %v1110_v61 = vsel %vm1080_vm6, %v1077_v11, %v824_v50 }
 0x174   : > { %v1112_v2 = vsel %vm1080_vm6, %v1079_v29, %v826_v30 }
 0x176   : > { %v859_v60 = vpop.permute.xlu0 %858 }
 0x177   : > { %v861_v51 = vpop.permute.xlu1 %860  ;;  %v1143_v4 = vsel %vm1113_vm7, %v1110_v61, %v859_v60 }
 0x178   : > { %v1145_v17 = vsel %vm1113_vm7, %v1112_v2, %v861_v51 }
 0x17a   : > { %v896_v52 = vpop.permute.xlu0 %895 }
 0x17b   : > { %v898_v55 = vpop.permute.xlu1 %897  ;;  %v2084_v56 = vpop.f32.mrb[0].mxu0  ;;  %v1176_v18 = vsel %vm1146_vm8, %v1143_v4, %v896_v52 }
 0x17c   : > { %v2027_v58 = vpack.c.bf16 %v2084_v56, %v2084_v56  ;;  %v1336_v59 = vpop.f32.mrb[1].mxu0  ;;  %v1700_v5 = vmul.f32 %v2084_v56, %v2084_v56  ;;  %v1628_v20 = vsel %vm1014_vm4, %v2084_v56, 0.0  ;;  %v1178_v25 = vsel %vm1146_vm8, %v1145_v17, %v898_v55 }
 0x17d   : > { %v2025_v62 = vpack.c.bf16 %v1336_v59, %v1336_v59  ;;  %v1698_v9 = vmul.f32 %v1336_v59, %v1336_v59  ;;  %v2085_v63 = vpop.f32.mrb[2].mxu0  ;;  %v1625_v8 = vsel %vm1014_vm4, %v1336_v59, 0.0 }
 0x17e   : > { %1594 = vst.msk [vmem:[%s2757_s20 + $0x8] sm:$0xf] %vm1591_vm12, %v2027_v58  ;;  %v2028_v6 = vpack.c.bf16 %v2085_v63, %v2085_v63  ;;  %v1339_v28 = vpop.f32.mrb[3].mxu0  ;;  %v943_v7 = vpop.permute.xlu0 %942  ;;  %v1701_v22 = vmul.f32 %v2085_v63, %v2085_v63  ;;  %v1733_v1 = vsel %vm1014_vm4, %v1700_v5, 0.0  ;;  %v1630_v33 = vsel %vm1014_vm4, %v2085_v63, 0.0 }
 0x17f   : > { %1592 = vst.msk [vmem:[%s2757_s20] sm:$0xf] %vm1591_vm12, %v2025_v62  ;;  %v945_v13 = vpop.permute.xlu1 %944  ;;  %v2026_v15 = vpack.c.bf16 %v1339_v28, %v1339_v28  ;;  %v1626_v12 = vsel %vm1014_vm4, %v1339_v28, 0.0  ;;  %v1699_v16 = vmul.f32 %v1339_v28, %v1339_v28  ;;  %v1730_v21 = vsel %vm1014_vm4, %v1698_v9, 0.0 }
 0x180   : > { %1595 = vst.msk [vmem:[%s2757_s20 + $0xc] sm:$0xf] %vm1591_vm12, %v2028_v6  ;;  %v1627_v19 = vadd.f32 %v1626_v12, %v1625_v8  ;;  %v1209_v31 = vsel %vm1179_vm9, %v1176_v18, %v943_v7  ;;  %v1211_v34 = vsel %vm1179_vm9, %v1178_v25, %v945_v13  ;;  %v1735_v0 = vsel %vm1014_vm4, %v1701_v22, 0.0 }
 0x181   : > { %1593 = vst.msk [vmem:[%s2757_s20 + $0x4] sm:$0xf] %vm1591_vm12, %v2026_v15  ;;  %v1731_v24 = vsel %vm1014_vm4, %v1699_v16, 0.0 }
 0x182   : > { %v1629_v26 = vadd.f32 %v1628_v20, %v1627_v19  ;;  %v1732_v3 = vadd.f32 %v1731_v24, %v1730_v21  ;;  %v978_v32 = vpop.permute.xlu0 %977 }
 0x183   : > { %v980_v39 = vpop.permute.xlu1 %979  ;;  %v1242_v35 = vsel %vm1212_vm10, %v1209_v31, %v978_v32 }
 0x184   : > { %v1734_v36 = vadd.f32 %v1733_v1, %v1732_v3  ;;  %v1244_v37 = vsel %vm1212_vm10, %v1211_v34, %v980_v39  ;;  %2110 = vmatprep.mubr.msk.bf16.mxu1 %vm1265_vm11, %v1242_v35  ;;  %v1631_v10 = vadd.f32 %v1630_v33, %v1629_v26 }
 0x185   : > { %2111 = vmatmul.mubr.msk.bf16.gmra.mrb[12].mxu1 %vm1265_vm11, %v1244_v37 }
 0x186   : > { %v1736_v38 = vadd.f32 %v1735_v0, %v1734_v36 }
 0x19b   : > { %v2088_v48 = vpop.f32.mrb[4].mxu0 }
 0x19c   : > { %v2031_v49 = vpack.c.bf16 %v2088_v48, %v2088_v48  ;;  %v1352_v40 = vpop.f32.mrb[5].mxu0  ;;  %v1704_v30 = vmul.f32 %v2088_v48, %v2088_v48  ;;  %v1636_v52 = vsel %vm1014_vm4, %v2088_v48, 0.0 }
 0x19d   : > { %v2029_v27 = vpack.c.bf16 %v1352_v40, %v1352_v40  ;;  %v1632_v14 = vsel %vm1014_vm4, %v1352_v40, 0.0  ;;  %v1702_v41 = vmul.f32 %v1352_v40, %v1352_v40  ;;  %v2089_v42 = vpop.f32.mrb[6].mxu0 }
 0x19e   : > { %1598 = vst.msk [vmem:[%s2757_s20 + $0x18] sm:$0xf] %vm1591_vm12, %v2031_v49  ;;  %v1633_v43 = vadd.f32 %v1632_v14, %v1631_v10  ;;  %v2032_v44 = vpack.c.bf16 %v2089_v42, %v2089_v42  ;;  %v1355_v45 = vpop.f32.mrb[7].mxu0  ;;  %v1705_v53 = vmul.f32 %v2089_v42, %v2089_v42  ;;  %v1638_v56 = vsel %vm1014_vm4, %v2089_v42, 0.0 }
 0x19f   : > { %1596 = vst.msk [vmem:[%s2757_s20 + $0x10] sm:$0xf] %vm1591_vm12, %v2029_v27  ;;  %v1737_v46 = vsel %vm1014_vm4, %v1702_v41, 0.0  ;;  %v2030_v47 = vpack.c.bf16 %v1355_v45, %v1355_v45  ;;  %v1634_v50 = vsel %vm1014_vm4, %v1355_v45, 0.0  ;;  %v1703_v23 = vmul.f32 %v1355_v45, %v1355_v45 }
 0x1a0   : > { %v1738_v60 = vadd.f32 %v1737_v46, %v1736_v38  ;;  %1599 = vst.msk [vmem:[%s2757_s20 + $0x1c] sm:$0xf] %vm1591_vm12, %v2032_v44  ;;  %v1635_v51 = vadd.f32 %v1634_v50, %v1633_v43  ;;  %v1741_v11 = vsel %vm1014_vm4, %v1704_v30, 0.0  ;;  %v1743_v29 = vsel %vm1014_vm4, %v1705_v53, 0.0 }
 0x1a1   : > { %1597 = vst.msk [vmem:[%s2757_s20 + $0x14] sm:$0xf] %vm1591_vm12, %v2030_v47  ;;  %v1739_v55 = vsel %vm1014_vm4, %v1703_v23, 0.0  ;;  %v2227_v30 = vmov 0.0  }
 0x1a2   : > { %v1637_v54 = vadd.f32 %v1636_v52, %v1635_v51  ;;  %v1740_v57 = vadd.f32 %v1739_v55, %v1738_v60  ;;  %253 = vst.msk [vmem:[%s2833_s23] sm:$0x1] %vm252_vm13, %v2227_v30  ;;  %254 = vst.msk [vmem:[%s2839_s26] sm:$0x1] %vm252_vm13, %v2227_v30 }
 0x1a4   : > { %v1639_v58 = vadd.f32 %v1638_v56, %v1637_v54  ;;  %v1742_v59 = vadd.f32 %v1741_v11, %v1740_v57 }
 0x1a6   : > { %v1744_v61 = vadd.f32 %v1743_v29, %v1742_v59 }
 0x1bb   : > { %v2092_v62 = vpop.f32.mrb[8].mxu0 }
 0x1bc   : > { %v2035_v9 = vpack.c.bf16 %v2092_v62, %v2092_v62  ;;  %v1368_v63 = vpop.f32.mrb[9].mxu0  ;;  %v1708_v16 = vmul.f32 %v2092_v62, %v2092_v62  ;;  %v1644_v20 = vsel %vm1014_vm4, %v2092_v62, 0.0 }
 0x1bd   : > { %v2033_v2 = vpack.c.bf16 %v1368_v63, %v1368_v63  ;;  %v1640_v4 = vsel %vm1014_vm4, %v1368_v63, 0.0  ;;  %v1706_v5 = vmul.f32 %v1368_v63, %v1368_v63  ;;  %v2093_v6 = vpop.f32.mrb[10].mxu0 }
 0x1be   : > { %1602 = vst.msk [vmem:[%s2757_s20 + $0x28] sm:$0xf] %vm1591_vm12, %v2035_v9  ;;  %v1641_v28 = vadd.f32 %v1640_v4, %v1639_v58  ;;  %v2036_v7 = vpack.c.bf16 %v2093_v6, %v2093_v6  ;;  %v1371_v8 = vpop.f32.mrb[11].mxu0  ;;  %v1709_v21 = vmul.f32 %v2093_v6, %v2093_v6  ;;  %v1646_v25 = vsel %vm1014_vm4, %v2093_v6, 0.0 }
 0x1bf   : > { %1600 = vst.msk [vmem:[%s2757_s20 + $0x20] sm:$0xf] %vm1591_vm12, %v2033_v2  ;;  %v1745_v13 = vsel %vm1014_vm4, %v1706_v5, 0.0  ;;  %v2034_v15 = vpack.c.bf16 %v1371_v8, %v1371_v8  ;;  %v1642_v12 = vsel %vm1014_vm4, %v1371_v8, 0.0  ;;  %v1707_v19 = vmul.f32 %v1371_v8, %v1371_v8 }
 0x1c0   : > { %v1746_v17 = vadd.f32 %v1745_v13, %v1744_v61  ;;  %1603 = vst.msk [vmem:[%s2757_s20 + $0x2c] sm:$0xf] %vm1591_vm12, %v2036_v7  ;;  %v1643_v18 = vadd.f32 %v1642_v12, %v1641_v28  ;;  %v1749_v3 = vsel %vm1014_vm4, %v1708_v16, 0.0  ;;  %v1751_v1 = vsel %vm1014_vm4, %v1709_v21, 0.0 }
 0x1c1   : > { %1601 = vst.msk [vmem:[%s2757_s20 + $0x24] sm:$0xf] %vm1591_vm12, %v2034_v15  ;;  %v1747_v24 = vsel %vm1014_vm4, %v1707_v19, 0.0 }
 0x1c2   : > { %v1645_v22 = vadd.f32 %v1644_v20, %v1643_v18  ;;  %v1748_v26 = vadd.f32 %v1747_v24, %v1746_v17 }
 0x1c4   : > { %v1647_v31 = vadd.f32 %v1646_v25, %v1645_v22  ;;  %v1750_v32 = vadd.f32 %v1749_v3, %v1748_v26 }
 0x1c6   : > { %v1752_v33 = vadd.f32 %v1751_v1, %v1750_v32 }
 0x1db   : > { %v2096_v34 = vpop.f32.mrb[12].mxu0 }
 0x1dc   : > { %v2039_v39 = vpack.c.bf16 %v2096_v34, %v2096_v34  ;;  %v1384_v35 = vpop.f32.mrb[13].mxu0  ;;  %v1712_v40 = vmul.f32 %v2096_v34, %v2096_v34  ;;  %v1652_v45 = vsel %vm1014_vm4, %v2096_v34, 0.0 }
 0x1dd   : > { %v2037_v36 = vpack.c.bf16 %v1384_v35, %v1384_v35  ;;  %v1648_v37 = vsel %vm1014_vm4, %v1384_v35, 0.0  ;;  %v1710_v10 = vmul.f32 %v1384_v35, %v1384_v35  ;;  %v2097_v0 = vpop.f32.mrb[14].mxu0 }
 0x1de   : > { %1606 = vst.msk [vmem:[%s2757_s20 + $0x38] sm:$0xf] %vm1591_vm12, %v2039_v39  ;;  %v1649_v38 = vadd.f32 %v1648_v37, %v1647_v31  ;;  %v2040_v48 = vpack.c.bf16 %v2097_v0, %v2097_v0  ;;  %v1387_v49 = vpop.f32.mrb[15].mxu0  ;;  %v1713_v46 = vmul.f32 %v2097_v0, %v2097_v0  ;;  %v1654_v60 = vsel %vm1014_vm4, %v2097_v0, 0.0 }
 0x1df   : > { %1604 = vst.msk [vmem:[%s2757_s20 + $0x30] sm:$0xf] %vm1591_vm12, %v2037_v36  ;;  %v1753_v27 = vsel %vm1014_vm4, %v1710_v10, 0.0  ;;  %v2038_v14 = vpack.c.bf16 %v1387_v49, %v1387_v49  ;;  %v1650_v41 = vsel %vm1014_vm4, %v1387_v49, 0.0  ;;  %v1711_v44 = vmul.f32 %v1387_v49, %v1387_v49 }
 0x1e0   : > { %v1754_v42 = vadd.f32 %v1753_v27, %v1752_v33  ;;  %1607 = vst.msk [vmem:[%s2757_s20 + $0x3c] sm:$0xf] %vm1591_vm12, %v2040_v48  ;;  %v1651_v43 = vadd.f32 %v1650_v41, %v1649_v38  ;;  %v1757_v23 = vsel %vm1014_vm4, %v1712_v40, 0.0  ;;  %v1759_v54 = vsel %vm1014_vm4, %v1713_v46, 0.0 }
 0x1e1   : > { %1605 = vst.msk [vmem:[%s2757_s20 + $0x34] sm:$0xf] %vm1591_vm12, %v2038_v14  ;;  %v1755_v50 = vsel %vm1014_vm4, %v1711_v44, 0.0 }
 0x1e2   : > { %v1653_v47 = vadd.f32 %v1652_v45, %v1651_v43  ;;  %v1756_v51 = vadd.f32 %v1755_v50, %v1754_v42 }
 0x1e4   : > { %v1655_v52 = vadd.f32 %v1654_v60, %v1653_v47  ;;  %v1758_v53 = vadd.f32 %v1757_v23, %v1756_v51 }
 0x1e6   : > { %v1760_v55 = vadd.f32 %v1759_v54, %v1758_v53 }
 0x1fb   : > { %v2100_v56 = vpop.f32.mrb[0].mxu1 }
 0x1fc   : > { %v2043_v57 = vpack.c.bf16 %v2100_v56, %v2100_v56  ;;  %v1400_v11 = vpop.f32.mrb[1].mxu1  ;;  %v1716_v6 = vmul.f32 %v2100_v56, %v2100_v56  ;;  %v1660_v13 = vsel %vm1014_vm4, %v2100_v56, 0.0 }
 0x1fd   : > { %v2041_v58 = vpack.c.bf16 %v1400_v11, %v1400_v11  ;;  %v1656_v59 = vsel %vm1014_vm4, %v1400_v11, 0.0  ;;  %v1714_v29 = vmul.f32 %v1400_v11, %v1400_v11  ;;  %v2101_v61 = vpop.f32.mrb[2].mxu1 }
 0x1fe   : > { %1610 = vst.msk [vmem:[%s2757_s20 + $0x48] sm:$0xf] %vm1591_vm12, %v2043_v57  ;;  %v1657_v62 = vadd.f32 %v1656_v59, %v1655_v52  ;;  %v2044_v9 = vpack.c.bf16 %v2101_v61, %v2101_v61  ;;  %v1403_v63 = vpop.f32.mrb[3].mxu1  ;;  %v1717_v15 = vmul.f32 %v2101_v61, %v2101_v61  ;;  %v1662_v17 = vsel %vm1014_vm4, %v2101_v61, 0.0 }
 0x1ff   : > { %1608 = vst.msk [vmem:[%s2757_s20 + $0x40] sm:$0xf] %vm1591_vm12, %v2041_v58  ;;  %v1761_v2 = vsel %vm1014_vm4, %v1714_v29, 0.0  ;;  %v2042_v4 = vpack.c.bf16 %v1403_v63, %v1403_v63  ;;  %v1658_v5 = vsel %vm1014_vm4, %v1403_v63, 0.0  ;;  %v1715_v8 = vmul.f32 %v1403_v63, %v1403_v63 }
 0x200   : > { %v1762_v28 = vadd.f32 %v1761_v2, %v1760_v55  ;;  %1611 = vst.msk [vmem:[%s2757_s20 + $0x4c] sm:$0xf] %vm1591_vm12, %v2044_v9  ;;  %v1659_v7 = vadd.f32 %v1658_v5, %v1657_v62  ;;  %v1765_v19 = vsel %vm1014_vm4, %v1716_v6, 0.0  ;;  %v1767_v22 = vsel %vm1014_vm4, %v1717_v15, 0.0 }
 0x201   : > { %1609 = vst.msk [vmem:[%s2757_s20 + $0x44] sm:$0xf] %vm1591_vm12, %v2042_v4  ;;  %v1763_v16 = vsel %vm1014_vm4, %v1715_v8, 0.0 }
 0x202   : > { %v1661_v12 = vadd.f32 %v1660_v13, %v1659_v7  ;;  %v1764_v18 = vadd.f32 %v1763_v16, %v1762_v28 }
 0x204   : > { %v1663_v20 = vadd.f32 %v1662_v17, %v1661_v12  ;;  %v1766_v21 = vadd.f32 %v1765_v19, %v1764_v18 }
 0x206   : > { %v1768_v24 = vadd.f32 %v1767_v22, %v1766_v21 }
 0x21b   : > { %v2104_v25 = vpop.f32.mrb[4].mxu1 }
 0x21c   : > { %v2047_v26 = vpack.c.bf16 %v2104_v25, %v2104_v25  ;;  %v1416_v3 = vpop.f32.mrb[5].mxu1  ;;  %v1720_v0 = vmul.f32 %v2104_v25, %v2104_v25  ;;  %v1668_v40 = vsel %vm1014_vm4, %v2104_v25, 0.0 }
 0x21d   : > { %v2045_v31 = vpack.c.bf16 %v1416_v3, %v1416_v3  ;;  %v1664_v32 = vsel %vm1014_vm4, %v1416_v3, 0.0  ;;  %v1718_v1 = vmul.f32 %v1416_v3, %v1416_v3  ;;  %v2105_v33 = vpop.f32.mrb[6].mxu1 }
 0x21e   : > { %1614 = vst.msk [vmem:[%s2757_s20 + $0x58] sm:$0xf] %vm1591_vm12, %v2047_v26  ;;  %v1665_v34 = vadd.f32 %v1664_v32, %v1663_v20  ;;  %v2048_v39 = vpack.c.bf16 %v2105_v33, %v2105_v33  ;;  %v1419_v35 = vpop.f32.mrb[7].mxu1  ;;  %v1721_v27 = vmul.f32 %v2105_v33, %v2105_v33  ;;  %v1670_v42 = vsel %vm1014_vm4, %v2105_v33, 0.0 }
 0x21f   : > { %1612 = vst.msk [vmem:[%s2757_s20 + $0x50] sm:$0xf] %vm1591_vm12, %v2045_v31  ;;  %v1769_v36 = vsel %vm1014_vm4, %v1718_v1, 0.0  ;;  %v2046_v37 = vpack.c.bf16 %v1419_v35, %v1419_v35  ;;  %v1666_v10 = vsel %vm1014_vm4, %v1419_v35, 0.0  ;;  %v1719_v49 = vmul.f32 %v1419_v35, %v1419_v35 }
 0x220   : > { %v1770_v38 = vadd.f32 %v1769_v36, %v1768_v24  ;;  %1615 = vst.msk [vmem:[%s2757_s20 + $0x5c] sm:$0xf] %vm1591_vm12, %v2048_v39  ;;  %v1667_v48 = vadd.f32 %v1666_v10, %v1665_v34  ;;  %v1773_v44 = vsel %vm1014_vm4, %v1720_v0, 0.0  ;;  %v1775_v47 = vsel %vm1014_vm4, %v1721_v27, 0.0 }
 0x221   : > { %1613 = vst.msk [vmem:[%s2757_s20 + $0x54] sm:$0xf] %vm1591_vm12, %v2046_v37  ;;  %v1771_v41 = vsel %vm1014_vm4, %v1719_v49, 0.0 }
 0x222   : > { %v1669_v14 = vadd.f32 %v1668_v40, %v1667_v48  ;;  %v1772_v43 = vadd.f32 %v1771_v41, %v1770_v38 }
 0x224   : > { %v1671_v45 = vadd.f32 %v1670_v42, %v1669_v14  ;;  %v1774_v46 = vadd.f32 %v1773_v44, %v1772_v43 }
 0x226   : > { %v1776_v50 = vadd.f32 %v1775_v47, %v1774_v46 }
 0x23b   : > { %v2108_v30 = vpop.f32.mrb[8].mxu1 }
 0x23c   : > { %v2051_v60 = vpack.c.bf16 %v2108_v30, %v2108_v30  ;;  %v1432_v51 = vpop.f32.mrb[9].mxu1  ;;  %v1724_v29 = vmul.f32 %v2108_v30, %v2108_v30  ;;  %v1676_v63 = vsel %vm1014_vm4, %v2108_v30, 0.0  ;;  %v1624_v30 = vld [vmem:[%s2833_s23] sm:$0x1] }
 0x23d   : > { %v2049_v23 = vpack.c.bf16 %v1432_v51, %v1432_v51  ;;  %v1672_v52 = vsel %vm1014_vm4, %v1432_v51, 0.0  ;;  %v1722_v53 = vmul.f32 %v1432_v51, %v1432_v51  ;;  %v2109_v54 = vpop.f32.mrb[10].mxu1 }
 0x23e   : > { %1618 = vst.msk [vmem:[%s2757_s20 + $0x68] sm:$0xf] %vm1591_vm12, %v2051_v60  ;;  %v1673_v55 = vadd.f32 %v1672_v52, %v1671_v45  ;;  %v2052_v56 = vpack.c.bf16 %v2109_v54, %v2109_v54  ;;  %v1435_v57 = vpop.f32.mrb[11].mxu1  ;;  %v1725_v2 = vmul.f32 %v2109_v54, %v2109_v54  ;;  %v1678_v6 = vsel %vm1014_vm4, %v2109_v54, 0.0 }
 0x23f   : > { %1616 = vst.msk [vmem:[%s2757_s20 + $0x60] sm:$0xf] %vm1591_vm12, %v2049_v23  ;;  %v1777_v11 = vsel %vm1014_vm4, %v1722_v53, 0.0  ;;  %v2050_v58 = vpack.c.bf16 %v1435_v57, %v1435_v57  ;;  %v1674_v59 = vsel %vm1014_vm4, %v1435_v57, 0.0  ;;  %v1723_v9 = vmul.f32 %v1435_v57, %v1435_v57  ;;  %v1697_v53 = vld [vmem:[%s2839_s26] sm:$0x1] }
 0x240   : > { %v1778_v61 = vadd.f32 %v1777_v11, %v1776_v50  ;;  %1619 = vst.msk [vmem:[%s2757_s20 + $0x6c] sm:$0xf] %vm1591_vm12, %v2052_v56  ;;  %v1675_v62 = vadd.f32 %v1674_v59, %v1673_v55  ;;  %v1781_v7 = vsel %vm1014_vm4, %v1724_v29, 0.0  ;;  %v1783_v15 = vsel %vm1014_vm4, %v1725_v2, 0.0 }
 0x241   : > { %1617 = vst.msk [vmem:[%s2757_s20 + $0x64] sm:$0xf] %vm1591_vm12, %v2050_v58  ;;  %v1779_v5 = vsel %vm1014_vm4, %v1723_v9, 0.0 }
 0x242   : > { %v1677_v4 = vadd.f32 %v1676_v63, %v1675_v62  ;;  %v1780_v28 = vadd.f32 %v1779_v5, %v1778_v61 }
 0x244   : > { %v1679_v8 = vadd.f32 %v1678_v6, %v1677_v4  ;;  %v1782_v13 = vadd.f32 %v1781_v7, %v1780_v28 }
 0x246   : > { %v1784_v12 = vadd.f32 %v1783_v15, %v1782_v13 }
 0x258   : > { %v2112_v16 = vpop.f32.mrb[12].mxu1 }
 0x259   : > { %v2055_v17 = vpack.c.bf16 %v2112_v16, %v2112_v16  ;;  %v1448_v18 = vpop.f32.mrb[13].mxu1  ;;  %v1728_v1 = vmul.f32 %v2112_v16, %v2112_v16  ;;  %v1684_v35 = vsel %vm1014_vm4, %v2112_v16, 0.0 }
 0x25a   : > { %v2053_v19 = vpack.c.bf16 %v1448_v18, %v1448_v18  ;;  %v1680_v20 = vsel %vm1014_vm4, %v1448_v18, 0.0  ;;  %v1726_v21 = vmul.f32 %v1448_v18, %v1448_v18  ;;  %v2113_v22 = vpop.f32.mrb[14].mxu1 }
 0x25b   : > { %1622 = vst.msk [vmem:[%s2757_s20 + $0x78] sm:$0xf] %vm1591_vm12, %v2055_v17  ;;  %v1681_v24 = vadd.f32 %v1680_v20, %v1679_v8  ;;  %v2056_v25 = vpack.c.bf16 %v2113_v22, %v2113_v22  ;;  %v1451_v26 = vpop.f32.mrb[15].mxu1  ;;  %v1729_v36 = vmul.f32 %v2113_v22, %v2113_v22  ;;  %v1686_v0 = vsel %vm1014_vm4, %v2113_v22, 0.0 }
 0x25c   : > { %1620 = vst.msk [vmem:[%s2757_s20 + $0x70] sm:$0xf] %vm1591_vm12, %v2053_v19  ;;  %v1785_v3 = vsel %vm1014_vm4, %v1726_v21, 0.0  ;;  %v2054_v31 = vpack.c.bf16 %v1451_v26, %v1451_v26  ;;  %v1682_v32 = vsel %vm1014_vm4, %v1451_v26, 0.0  ;;  %v1727_v39 = vmul.f32 %v1451_v26, %v1451_v26 }
 0x25d   : > { %v1786_v33 = vadd.f32 %v1785_v3, %v1784_v12  ;;  %1623 = vst.msk [vmem:[%s2757_s20 + $0x7c] sm:$0xf] %vm1591_vm12, %v2056_v25  ;;  %v1683_v34 = vadd.f32 %v1682_v32, %v1681_v24  ;;  %v1789_v48 = vsel %vm1014_vm4, %v1728_v1, 0.0  ;;  %v1791_v27 = vsel %vm1014_vm4, %v1729_v36, 0.0 }
 0x25e   : > { %1621 = vst.msk [vmem:[%s2757_s20 + $0x74] sm:$0xf] %vm1591_vm12, %v2054_v31  ;;  %v1787_v10 = vsel %vm1014_vm4, %v1727_v39, 0.0 }
 0x25f   : > { %v1685_v37 = vadd.f32 %v1684_v35, %v1683_v34  ;;  %v1788_v38 = vadd.f32 %v1787_v10, %v1786_v33 }
 0x261   : > { %v1687_v49 = vadd.f32 %v1686_v0, %v1685_v37  ;;  %v1790_v40 = vadd.f32 %v1789_v48, %v1788_v38 }
 0x263   : > { %v1688_v14 = vrot.slane %v1687_v49, 4  ;;  %v1792_v41 = vadd.f32 %v1791_v27, %v1790_v40 }
 0x265   : > { %v1689_v42 = vadd.f32 %v1688_v14, %v1687_v49  ;;  %v1793_v43 = vrot.slane %v1792_v41, 4 }
 0x267   : > { %v1690_v44 = vrot.slane %v1689_v42, 2  ;;  %v1794_v45 = vadd.f32 %v1793_v43, %v1792_v41 }
 0x269   : > { %v1691_v46 = vadd.f32 %v1690_v44, %v1689_v42  ;;  %v1795_v47 = vrot.slane %v1794_v45, 2 }
 0x26b   : > { %v1692_v50 = vrot.slane %v1691_v46, 1  ;;  %v1796_v60 = vadd.f32 %v1795_v47, %v1794_v45 }
 0x26d   : > { %v1693_v51 = vadd.f32 %v1692_v50, %v1691_v46  ;;  %v1797_v23 = vrot.slane %v1796_v60, 1 }
 0x26f   : > { %v1694_v52 = vadd.f32 %v1693_v51, %v1624_v30  ;;  %v1798_v54 = vadd.f32 %v1797_v23, %v1796_v60 }
 0x271   : > { %1696 = vst.msk [vmem:[%s2833_s23] sm:$0x1] %vm252_vm13, %v1694_v52  ;;  %v1799_v55 = vadd.f32 %v1798_v54, %v1697_v53 }
 0x273   : > { %1800 = vst.msk [vmem:[%s2839_s26] sm:$0x1] %vm252_vm13, %v1799_v55 }
 0x274 PF: > { %s15_s17 = sadd.s32 1, %s2217_s17   ;;  %s2938_s15 = smov %s2213_s16 }
 0x275   : > { %p12_p6 = scmp.ge.s32.totalorder %s15_s17, 4   ;;  %s2939_s16 = smov %s2941_s18 }
 0x277   :  { %14 = sbr.rel (!%p12_p6) target bundleno = 2 (0x2), region = 86 }

</bundles_post_ra>
